<compile_context>
chip_gen: v5e
topology: v5e:2x2
jax: 0.10.0
libtpu: 0.0.40
codegen_flags: <defaults>
</compile_context>

<pallas_src>
import jax
import jax.numpy as jnp
from jax.experimental import pallas as pl
from jax.experimental.pallas import tpu as pltpu

_HIDDEN = 500          # logical hidden size of arch.fc
_HIDDEN_PAD = 512      # lane-dense padded hidden size (4 * 128)


def _round_up(x, m):
    return ((x + m - 1) // m) * m


# ---------------------------------------------------------------------------
# Kernel
# ---------------------------------------------------------------------------
def _net_kernel(x_ref, w1_ref, b1_ref, w2_ref, b2_ref, out_ref, pooled_ref):
    # x_ref  : (TB, C, THW)  activation slab in native NCHW (spatial flattened)
    # w1_ref : (C, 512)   b1_ref: (1, 512)   w2_ref: (1, 512)   b2_ref: (1, 1)
    # out_ref: (TB, 1)    pooled_ref: (TB, C) f32 accumulator scratch
    s = pl.program_id(1)

    @pl.when(s == 0)
    def _():
        pooled_ref[...] = jnp.zeros_like(pooled_ref)

    # Sum-pool this spatial slab over the lane (HW) axis (XLU reduce, hidden
    # under DMA).  Upcast to f32 first so bf16 inputs accumulate exactly.
    # The 1/(H*W) average-pool scale is folded into w1, so this is a GAP.
    pooled_ref[...] += jnp.sum(x_ref[...].astype(jnp.float32), axis=2)

    @pl.when(s == pl.num_programs(1) - 1)
    def _():
        # arch.fc : Linear(C, 500) zero-padded to 512 -> MXU matmul.
        feats = (
            jnp.dot(pooled_ref[...], w1_ref[...],
                    preferred_element_type=jnp.float32)
            + b1_ref[...]
        )
        # self.ouput : Linear(500, 1) as VPU multiply + lane reduce (an N=1
        # MXU matmul would waste the MXU; padded columns of w2 are zero).
        out = jnp.sum(feats * w2_ref[...], axis=-1, keepdims=True) + b2_ref[...]
        out_ref[...] = out.astype(out_ref.dtype)


# ---------------------------------------------------------------------------
# Tiling / VMEM planning (trace-time Python)
# ---------------------------------------------------------------------------
def _vmem_plan():
    """(activation_budget_bytes, vmem_limit_cap_bytes) per TPU generation."""
    kind = ""
    try:
        kind = jax.devices()[0].device_kind.lower()
    except Exception:
        pass
    # v5e / v6e have 128 MiB physical VMEM -> big tiles, raised scoped limit.
    big = any(t in kind for t in ("v5", "v6")) and "7" not in kind
    if big:
        return 80 << 20, 110 << 20
    # v7x (64 MiB physical) or unknown chip: conservative, portable budget.
    return 36 << 20, 48 << 20


def _choose_batch_tile(b_pad, tb_max):
    """TB = 8*d where d divides b_pad//8 and 8*d <= tb_max; prefer a divisor
    that leaves >= 2 grid steps (keeps both v7x TensorCores busy).  Because
    TB divides b_pad exactly, batch padding is always < 8 rows."""
    m = b_pad // 8
    divs = [d for d in range(1, m + 1) if m % d == 0 and 8 * d <= tb_max]
    if not divs:
        divs = [1]
    multi = [d for d in divs if m // d >= 2]
    d = max(multi) if multi else max(divs)
    return 8 * d


def _plan_tiles(B, C, HW, itemsize, act_budget):
    """Returns (TB, THW, Bp, HWp): batch/spatial tiles + padded extents.
    The double-buffered activation block 2*TB*C*THW*itemsize stays within
    act_budget; big feature maps get an HW grid axis in 128-lane multiples."""
    b_pad = _round_up(B, 8)
    full_row = 2 * C * HW * itemsize            # double-buffered, full HW
    if 8 * full_row <= act_budget:
        thw, hw_pad = HW, HW                    # no spatial tiling needed
    else:
        thw = max(128, (act_budget // (2 * 8 * C * itemsize)) // 128 * 128)
        hw_pad = _round_up(HW, thw)             # zero-pad: sum-pool safe
    tb_max = max(8, act_budget // (2 * C * thw * itemsize))
    tb = _choose_batch_tile(b_pad, tb_max)
    return tb, thw, b_pad, hw_pad


# ---------------------------------------------------------------------------
# Forward
# ---------------------------------------------------------------------------
@jax.jit
def net_forward(images, w_fc, b_fc, w_out, b_out):
    """images: (B, C, H, W) NCHW (f32 or bf16). Returns logits (B, 1) f32."""
    B, C, H, W = images.shape
    HW = H * W
    itemsize = jnp.dtype(images.dtype).itemsize

    # Free, contiguous reshape — NO transpose / relayout before the kernel.
    x = images.reshape(B, C, HW)

    # One-time (trace-time, constant-folded) parameter prep:
    #  * fold 1/HW pooling scale into w_fc,
    #  * zero-pad hidden 500 -> 512 for lane-dense tiles,
    #  * expose w_out as a (1, 512) row for the VPU path.
    hid = w_fc.shape[1]
    w1 = jnp.zeros((C, _HIDDEN_PAD), jnp.float32).at[:, :hid].set(
        w_fc.astype(jnp.float32) / jnp.float32(HW))
    b1 = jnp.zeros((1, _HIDDEN_PAD), jnp.float32).at[:, :hid].set(
        b_fc.astype(jnp.float32))
    w2 = jnp.zeros((1, _HIDDEN_PAD), jnp.float32).at[:, :hid].set(
        w_out[:, 0].astype(jnp.float32))
    b2 = b_out.reshape(1, 1).astype(jnp.float32)

    act_budget, vmem_cap = _vmem_plan()
    TB, THW, Bp, HWp = _plan_tiles(B, C, HW, itemsize, act_budget)

    # Only pad when strictly necessary (< 8 batch rows; HW only for huge
    # feature maps).  Padded logits are garbage and sliced off below.
    if Bp != B or HWp != HW:
        x = jnp.pad(x, ((0, Bp - B), (0, 0), (0, HWp - HW)))

    nb = Bp // TB
    nhw = HWp // THW

    # Explicit scoped-VMEM limit: activation block (double-buffered) +
    # resident weights (double-buffered) + scratch + slack, clamped per chip.
    act_bytes = 2 * TB * C * THW * itemsize
    weight_bytes = 2 * (C * _HIDDEN_PAD + 2 * _HIDDEN_PAD + 1) * 4
    scratch_bytes = TB * C * 4 + 2 * TB * 4
    vmem_limit = int(min(vmem_cap,
                         max(32 << 20,
                             act_bytes + weight_bytes + scratch_bytes + (8 << 20))))

    cost = pl.CostEstimate(
        flops=2 * Bp * C * _HIDDEN_PAD + Bp * C * HWp + 3 * Bp * _HIDDEN_PAD,
        transcendentals=0,
        bytes_accessed=(Bp * C * HWp * itemsize
                        + 4 * (C * _HIDDEN_PAD + 2 * _HIDDEN_PAD + 1 + Bp)),
    )

    out = pl.pallas_call(
        _net_kernel,
        out_shape=jax.ShapeDtypeStruct((Bp, 1), jnp.float32),
        grid=(nb, nhw),
        in_specs=[
            pl.BlockSpec((TB, C, THW), lambda i, s: (i, 0, s)),
            pl.BlockSpec((C, _HIDDEN_PAD), lambda i, s: (0, 0)),   # resident
            pl.BlockSpec((1, _HIDDEN_PAD), lambda i, s: (0, 0)),   # resident
            pl.BlockSpec((1, _HIDDEN_PAD), lambda i, s: (0, 0)),   # resident
            pl.BlockSpec((1, 1), lambda i, s: (0, 0)),             # resident
        ],
        out_specs=pl.BlockSpec((TB, 1), lambda i, s: (i, 0)),
        scratch_shapes=[pltpu.VMEM((TB, C), jnp.float32)],          # pooled acc
        compiler_params=pltpu.CompilerParams(
            dimension_semantics=("parallel", "arbitrary"),
            vmem_limit_bytes=vmem_limit,
        ),
        cost_estimate=cost,
    )(x, w1, b1, w2, b2)

    return out[:B]   # drop padded (garbage) rows — do not remove this slice.


# ---------------------------------------------------------------------------
# Params / reference / demo
# ---------------------------------------------------------------------------
def init_params(key, in_features, hidden=_HIDDEN, out=1):
    """PyTorch-style Linear init (uniform(-1/sqrt(fan_in), 1/sqrt(fan_in))).
    Weights stored as (in, out) so the kernel computes x @ W."""
    k1, k2, k3, k4 = jax.random.split(key, 4)
    lim1 = 1.0 / jnp.sqrt(jnp.float32(in_features))
    lim2 = 1.0 / jnp.sqrt(jnp.float32(hidden))
    w_fc = jax.random.uniform(k1, (in_features, hidden), jnp.float32, -lim1, lim1)
    b_fc = jax.random.uniform(k2, (hidden,), jnp.float32, -lim1, lim1)
    w_out = jax.random.uniform(k3, (hidden, out), jnp.float32, -lim2, lim2)
    b_out = jax.random.uniform(k4, (out,), jnp.float32, -lim2, lim2)
    return w_fc, b_fc, w_out, b_out


def _reference(images, w_fc, b_fc, w_out, b_out):
    pooled = jnp.mean(images.reshape(*images.shape[:2], -1), axis=-1)
    feats = pooled @ w_fc + b_fc
    return feats @ w_out + b_out


if __name__ == "__main__":
    # TODO(synk): the convolutional backbone `arch` itself is out of scope;
    # this kernel implements the module's head (GAP -> fc(500) -> ouput(1)).
    B, C, H, W = 2, 128, 8, 8
    key = jax.random.PRNGKey(0)
    k_img, k_par = jax.random.split(key)
    images = jax.random.normal(k_img, (B, C, H, W), dtype=jnp.float32)
    w_fc, b_fc, w_out, b_out = init_params(k_par, in_features=C)

    logits = net_forward(images, w_fc, b_fc, w_out, b_out)
    logits = jax.block_until_ready(logits)

    ref = _reference(images, w_fc, b_fc, w_out, b_out)
    assert logits.shape == (B, 1), logits.shape
    assert jnp.allclose(logits, ref, atol=1e-4, rtol=1e-4), (logits, ref)

    print("KERNEL_OK")
</pallas_src>

<mosaic_0001>
module attributes {stable_mosaic.version = 11 : i64} {
  func.func @_net_kernel(%arg0: i32, %arg1: i32, %arg2: memref<8x128x64xf32, #tpu.memory_space<vmem>>, %arg3: memref<128x512xf32, #tpu.memory_space<vmem>>, %arg4: memref<1x512xf32, #tpu.memory_space<vmem>>, %arg5: memref<1x512xf32, #tpu.memory_space<vmem>>, %arg6: memref<1x1xf32, #tpu.memory_space<vmem>>, %arg7: memref<8x1xf32, #tpu.memory_space<vmem>>, %arg8: memref<8x128xf32, #tpu.memory_space<vmem>>) attributes {dimension_semantics = [#tpu.dimension_semantics<parallel>, #tpu.dimension_semantics<arbitrary>], iteration_bounds = array<i64: 1, 1>, scalar_prefetch = 0 : i64, scratch_operands = 1 : i64, tpu.core_type = #tpu.core_type<tc>, window_params = [{transform_indices = @transform_0, window_bounds = array<i64: 8, 128, 64>}, {pipeline_mode = #tpu.pipeline_mode<synchronous>, transform_indices = @transform_1, window_bounds = array<i64: 128, 512>}, {pipeline_mode = #tpu.pipeline_mode<synchronous>, transform_indices = @transform_2, window_bounds = array<i64: 1, 512>}, {pipeline_mode = #tpu.pipeline_mode<synchronous>, transform_indices = @transform_3, window_bounds = array<i64: 1, 512>}, {pipeline_mode = #tpu.pipeline_mode<synchronous>, transform_indices = @transform_4, window_bounds = array<i64: 1, 1>}, {transform_indices = @transform_5, window_bounds = array<i64: 8, 1>}]} {
    %c0_i32 = arith.constant 0 : i32
    %0 = arith.cmpi eq, %arg1, %c0_i32 : i32
    %1 = arith.extui %0 : i1 to i32
    %c0_i32_0 = arith.constant 0 : i32
    %2 = arith.cmpi ne, %1, %c0_i32_0 : i32
    scf.if %2 {
      %cst_9 = arith.constant 0.000000e+00 : f32
      %11 = vector.broadcast %cst_9 : f32 to vector<8x128xf32>
      %c0_10 = arith.constant 0 : index
      %c0_11 = arith.constant 0 : index
      %12 = vector.load %arg8[%c0_10, %c0_11] : memref<8x128xf32, #tpu.memory_space<vmem>>, vector<8x128xf32>
      tpu.vector_store %arg8[%c0_10, %c0_11], %11 {strides = array<i32>} : memref<8x128xf32, #tpu.memory_space<vmem>>, vector<8x128xf32>,
    } else {
    }
    %c0 = arith.constant 0 : index
    %c0_1 = arith.constant 0 : index
    %3 = vector.load %arg8[%c0, %c0_1] : memref<8x128xf32, #tpu.memory_space<vmem>>, vector<8x128xf32>
    %c0_2 = arith.constant 0 : index
    %c0_3 = arith.constant 0 : index
    %c0_4 = arith.constant 0 : index
    %4 = vector.load %arg2[%c0_2, %c0_3, %c0_4] : memref<8x128x64xf32, #tpu.memory_space<vmem>>, vector<8x128x64xf32>
    %cst = arith.constant dense<0.000000e+00> : vector<8x128xf32>
    %5 = vector.multi_reduction <add>, %4, %cst [2] : vector<8x128x64xf32> to vector<8x128xf32>
    %6 = arith.addf %3, %5 : vector<8x128xf32>
    %c0_5 = arith.constant 0 : index
    %c0_6 = arith.constant 0 : index
    %7 = vector.load %arg8[%c0_5, %c0_6] : memref<8x128xf32, #tpu.memory_space<vmem>>, vector<8x128xf32>
    tpu.vector_store %arg8[%c0_5, %c0_6], %6 {strides = array<i32>} : memref<8x128xf32, #tpu.memory_space<vmem>>, vector<8x128xf32>,
    %c0_i32_7 = arith.constant 0 : i32
    %8 = arith.cmpi eq, %arg1, %c0_i32_7 : i32
    %9 = arith.extui %8 : i1 to i32
    %c0_i32_8 = arith.constant 0 : i32
    %10 = arith.cmpi ne, %9, %c0_i32_8 : i32
    scf.if %10 {
      %c0_9 = arith.constant 0 : index
      %c0_10 = arith.constant 0 : index
      %11 = vector.load %arg8[%c0_9, %c0_10] : memref<8x128xf32, #tpu.memory_space<vmem>>, vector<8x128xf32>
      %c0_11 = arith.constant 0 : index
      %c0_12 = arith.constant 0 : index
      %12 = vector.load %arg3[%c0_11, %c0_12] : memref<128x512xf32, #tpu.memory_space<vmem>>, vector<128x512xf32>
      %cst_13 = arith.constant dense<0.000000e+00> : vector<8x512xf32>
      %13 = tpu.matmul %11, %12, %cst_13 {dimension_numbers = #tpu.dot_dimension_numbers<[1], [0], [0], [1], [0, 0, 1, 1], [], []>} : vector<8x128xf32>, vector<128x512xf32>, vector<8x512xf32> -> vector<8x512xf32>
      %c0_14 = arith.constant 0 : index
      %c0_15 = arith.constant 0 : index
      %14 = vector.load %arg4[%c0_14, %c0_15] : memref<1x512xf32, #tpu.memory_space<vmem>>, vector<1x512xf32>
      %15 = vector.broadcast %14 : vector<1x512xf32> to vector<8x512xf32>
      %16 = arith.addf %13, %15 : vector<8x512xf32>
      %c0_16 = arith.constant 0 : index
      %c0_17 = arith.constant 0 : index
      %17 = vector.load %arg5[%c0_16, %c0_17] : memref<1x512xf32, #tpu.memory_space<vmem>>, vector<1x512xf32>
      %18 = vector.broadcast %17 : vector<1x512xf32> to vector<8x512xf32>
      %19 = arith.mulf %16, %18 : vector<8x512xf32>
      %cst_18 = arith.constant dense<0.000000e+00> : vector<8xf32>
      %20 = vector.multi_reduction <add>, %19, %cst_18 [1] : vector<8x512xf32> to vector<8xf32>
      %21 = vector.shape_cast %20 : vector<8xf32> to vector<8x1xf32>
      %c0_19 = arith.constant 0 : index
      %c0_20 = arith.constant 0 : index
      %22 = vector.load %arg6[%c0_19, %c0_20] : memref<1x1xf32, #tpu.memory_space<vmem>>, vector<1x1xf32>
      %23 = vector.broadcast %22 : vector<1x1xf32> to vector<8x1xf32>
      %24 = arith.addf %21, %23 : vector<8x1xf32>
      %c0_21 = arith.constant 0 : index
      %c0_22 = arith.constant 0 : index
      %25 = vector.load %arg7[%c0_21, %c0_22] : memref<8x1xf32, #tpu.memory_space<vmem>>, vector<8x1xf32>
      tpu.vector_store %arg7[%c0_21, %c0_22], %24 {strides = array<i32>} : memref<8x1xf32, #tpu.memory_space<vmem>>, vector<8x1xf32>,
    } else {
    }
    return
  }
  func.func @transform_0(%arg0: i32, %arg1: i32) -> (i32, i32, i32) {
    %c0_i32 = arith.constant 0 : i32
    %c0_i32_0 = arith.constant 0 : i32
    return %arg0, %c0_i32, %arg1 : i32, i32, i32
  }
  func.func @transform_1(%arg0: i32, %arg1: i32) -> (i32, i32) {
    %c0_i32 = arith.constant 0 : i32
    %c0_i32_0 = arith.constant 0 : i32
    %c0_i32_1 = arith.constant 0 : i32
    return %c0_i32, %c0_i32_0 : i32, i32
  }
  func.func @transform_2(%arg0: i32, %arg1: i32) -> (i32, i32) {
    %c0_i32 = arith.constant 0 : i32
    %c0_i32_0 = arith.constant 0 : i32
    %c0_i32_1 = arith.constant 0 : i32
    return %c0_i32, %c0_i32_0 : i32, i32
  }
  func.func @transform_3(%arg0: i32, %arg1: i32) -> (i32, i32) {
    %c0_i32 = arith.constant 0 : i32
    %c0_i32_0 = arith.constant 0 : i32
    %c0_i32_1 = arith.constant 0 : i32
    return %c0_i32, %c0_i32_0 : i32, i32
  }
  func.func @transform_4(%arg0: i32, %arg1: i32) -> (i32, i32) {
    %c0_i32 = arith.constant 0 : i32
    %c0_i32_0 = arith.constant 0 : i32
    %c0_i32_1 = arith.constant 0 : i32
    return %c0_i32, %c0_i32_0 : i32, i32
  }
  func.func @transform_5(%arg0: i32, %arg1: i32) -> (i32, i32) {
    %c0_i32 = arith.constant 0 : i32
    %c0_i32_0 = arith.constant 0 : i32
    return %arg0, %c0_i32 : i32, i32
  }
}

</mosaic_0001>

<bundles_post_ra>
// kernel: net_forward.1
= control target key start
LH: loop header
LB: loop body
LE: loop exit
PB: predicated region body
PF: predicated region fallthrough
CT: control target
= control target key end

     0   :  { %vm156_vm0 = vcmask 523264   ;;  %vm674_vm1 = vcmask 130112   ;;  %vm678_vm2 = vcmask 195712   ;;  %vm682_vm3 = vcmask 261312   ;;  %s2260_s0 = inlined_call_operand.vmem [shape: f32[8,128,64], index: 0, kind: input, shape index: {}]   ;;  %s2261_s1 = inlined_call_operand.vmem [shape: f32[128,512], index: 1, kind: input, shape index: {}]   ;;  %s2262_s4 = inlined_call_operand.<no memory space> [shape: f32[1,1], index: 4, kind: input, shape index: {}]   ;;  %s2263_s2 = inlined_call_operand.vmem [shape: f32[1,512], index: 2, kind: input, shape index: {}]   ;;  %s2264_s3 = inlined_call_operand.vmem [shape: f32[1,512], index: 3, kind: input, shape index: {}]   ;;  %s2265_s5 = inlined_call_operand.vmem [shape: f32[8,1], index: 5, kind: output, shape index: {}]  }
   0x1   :  { %v32_v0 = vld [vmem:[%s2260_s0 + $0x20] sm:$0xff]  ;;  %v30_v1 = vld [vmem:[%s2260_s0 + $0x10] sm:$0xff]  ;;  %v33_v6 = vld [vmem:[%s2260_s0 + $0x28] sm:$0xff]  ;;  %vm686_vm4 = vcmask 326912   ;;  %vm690_vm5 = vcmask 392512   ;;  %vm694_vm6 = vcmask 458112  }
   0x2   :  { %v28_v2 = vld [vmem:[%s2260_s0] sm:$0xff]  ;;  %v169_v3 = vsel %vm156_vm0, %v32_v0, 0.0  ;;  %v163_v4 = vsel %vm156_vm0, %v30_v1, 0.0  ;;  %v31_v7 = vld [vmem:[%s2260_s0 + $0x18] sm:$0xff]  ;;  %v29_v8 = vld [vmem:[%s2260_s0 + $0x8] sm:$0xff]  ;;  %v172_v9 = vsel %vm156_vm0, %v33_v6, 0.0 }
   0x3   :  { %v157_v5 = vsel %vm156_vm0, %v28_v2, 0.0  ;;  %170 = vadd.xlane.f32.xlu2 %v169_v3  ;;  %164 = vadd.xlane.f32.xlu1 %v163_v4  ;;  %v166_v10 = vsel %vm156_vm0, %v31_v7, 0.0  ;;  %v160_v11 = vsel %vm156_vm0, %v29_v8, 0.0  ;;  %v36_v12 = vld [vmem:[%s2260_s0 + $0x40] sm:$0xff]  ;;  %v35_v13 = vld [vmem:[%s2260_s0 + $0x38] sm:$0xff]  ;;  %v34_v14 = vld [vmem:[%s2260_s0 + $0x30] sm:$0xff] }
   0x4   :  { %158 = vadd.xlane.f32.xlu0 %v157_v5  ;;  %v181_v15 = vsel %vm156_vm0, %v36_v12, 0.0  ;;  %v178_v16 = vsel %vm156_vm0, %v35_v13, 0.0  ;;  %v175_v17 = vsel %vm156_vm0, %v34_v14, 0.0  ;;  %v39_v18 = vld [vmem:[%s2260_s0 + $0x58] sm:$0xff]  ;;  %v38_v19 = vld [vmem:[%s2260_s0 + $0x50] sm:$0xff]  ;;  %v37_v20 = vld [vmem:[%s2260_s0 + $0x48] sm:$0xff] }
   0x5   :  { %v190_v21 = vsel %vm156_vm0, %v39_v18, 0.0  ;;  %v187_v22 = vsel %vm156_vm0, %v38_v19, 0.0  ;;  %v184_v23 = vsel %vm156_vm0, %v37_v20, 0.0  ;;  %v42_v24 = vld [vmem:[%s2260_s0 + $0x70] sm:$0xff]  ;;  %v41_v25 = vld [vmem:[%s2260_s0 + $0x68] sm:$0xff]  ;;  %v40_v26 = vld [vmem:[%s2260_s0 + $0x60] sm:$0xff] }
   0x6   :  { %v199_v27 = vsel %vm156_vm0, %v42_v24, 0.0  ;;  %v196_v28 = vsel %vm156_vm0, %v41_v25, 0.0  ;;  %v193_v29 = vsel %vm156_vm0, %v40_v26, 0.0  ;;  %v45_v30 = vld [vmem:[%s2260_s0 + $0x88] sm:$0xff]  ;;  %v44_v31 = vld [vmem:[%s2260_s0 + $0x80] sm:$0xff]  ;;  %v43_v32 = vld [vmem:[%s2260_s0 + $0x78] sm:$0xff]  ;;  %v669_v26 = vlaneseq }
   0x7   :  { %v208_v33 = vsel %vm156_vm0, %v45_v30, 0.0  ;;  %v205_v34 = vsel %vm156_vm0, %v44_v31, 0.0  ;;  %v202_v35 = vsel %vm156_vm0, %v43_v32, 0.0  ;;  %v48_v36 = vld [vmem:[%s2260_s0 + $0xa0] sm:$0xff]  ;;  %v47_v37 = vld [vmem:[%s2260_s0 + $0x98] sm:$0xff]  ;;  %v46_v38 = vld [vmem:[%s2260_s0 + $0x90] sm:$0xff] }
   0x8   :  { %v217_v39 = vsel %vm156_vm0, %v48_v36, 0.0  ;;  %v214_v40 = vsel %vm156_vm0, %v47_v37, 0.0  ;;  %v211_v41 = vsel %vm156_vm0, %v46_v38, 0.0  ;;  %v51_v42 = vld [vmem:[%s2260_s0 + $0xb8] sm:$0xff]  ;;  %v50_v43 = vld [vmem:[%s2260_s0 + $0xb0] sm:$0xff]  ;;  %v49_v44 = vld [vmem:[%s2260_s0 + $0xa8] sm:$0xff] }
   0x9   :  { %v226_v45 = vsel %vm156_vm0, %v51_v42, 0.0  ;;  %v223_v46 = vsel %vm156_vm0, %v50_v43, 0.0  ;;  %v220_v47 = vsel %vm156_vm0, %v49_v44, 0.0  ;;  %v54_v48 = vld [vmem:[%s2260_s0 + $0xd0] sm:$0xff]  ;;  %v53_v49 = vld [vmem:[%s2260_s0 + $0xc8] sm:$0xff]  ;;  %v52_v50 = vld [vmem:[%s2260_s0 + $0xc0] sm:$0xff] }
   0xa   :  { %v235_v51 = vsel %vm156_vm0, %v54_v48, 0.0  ;;  %v232_v52 = vsel %vm156_vm0, %v53_v49, 0.0  ;;  %v229_v53 = vsel %vm156_vm0, %v52_v50, 0.0  ;;  %v57_v54 = vld [vmem:[%s2260_s0 + $0xe8] sm:$0xff]  ;;  %v56_v55 = vld [vmem:[%s2260_s0 + $0xe0] sm:$0xff]  ;;  %v55_v56 = vld [vmem:[%s2260_s0 + $0xd8] sm:$0xff] }
   0xb   :  { %173 = vadd.xlane.f32.xlu2 %v172_v9  ;;  %167 = vadd.xlane.f32.xlu1 %v166_v10  ;;  %v244_v57 = vsel %vm156_vm0, %v57_v54, 0.0  ;;  %v241_v58 = vsel %vm156_vm0, %v56_v55, 0.0  ;;  %v238_v59 = vsel %vm156_vm0, %v55_v56, 0.0  ;;  %v60_v60 = vld [vmem:[%s2260_s0 + $0x100] sm:$0xff]  ;;  %v59_v61 = vld [vmem:[%s2260_s0 + $0xf8] sm:$0xff]  ;;  %v58_v62 = vld [vmem:[%s2260_s0 + $0xf0] sm:$0xff] }
   0xc   :  { %161 = vadd.xlane.f32.xlu0 %v160_v11  ;;  %v253_v63 = vsel %vm156_vm0, %v60_v60, 0.0  ;;  %v250_v0 = vsel %vm156_vm0, %v59_v61, 0.0  ;;  %v247_v1 = vsel %vm156_vm0, %v58_v62, 0.0  ;;  %v63_v2 = vld [vmem:[%s2260_s0 + $0x118] sm:$0xff]  ;;  %v62_v3 = vld [vmem:[%s2260_s0 + $0x110] sm:$0xff]  ;;  %v61_v4 = vld [vmem:[%s2260_s0 + $0x108] sm:$0xff] }
   0xd   :  { %v262_v5 = vsel %vm156_vm0, %v63_v2, 0.0  ;;  %v259_v6 = vsel %vm156_vm0, %v62_v3, 0.0  ;;  %v256_v7 = vsel %vm156_vm0, %v61_v4, 0.0  ;;  %v66_v8 = vld [vmem:[%s2260_s0 + $0x130] sm:$0xff]  ;;  %v65_v9 = vld [vmem:[%s2260_s0 + $0x128] sm:$0xff]  ;;  %v64_v10 = vld [vmem:[%s2260_s0 + $0x120] sm:$0xff] }
   0xe   :  { %v271_v11 = vsel %vm156_vm0, %v66_v8, 0.0  ;;  %v268_v12 = vsel %vm156_vm0, %v65_v9, 0.0  ;;  %v265_v13 = vsel %vm156_vm0, %v64_v10, 0.0  ;;  %v69_v14 = vld [vmem:[%s2260_s0 + $0x148] sm:$0xff]  ;;  %v72_v20 = vld [vmem:[%s2260_s0 + $0x160] sm:$0xff]  ;;  %vm698_vm7 = vcmask 523712  }
   0xf   :  { %v73_v31 = vld [vmem:[%s2260_s0 + $0x168] sm:$0xff]  ;;  %vm702_vm8 = vcmask 589312   ;;  %vm706_vm9 = vcmask 654912   ;;  %vm710_vm10 = vcmask 720512   ;;  %vm714_vm11 = vcmask 786112  }
  0x10   :  { %v292_v36 = vsel %vm156_vm0, %v73_v31, 0.0  ;;  %vm2267_vm12 = vcmask 851712   ;;  %vm2266_vm13 = vcmask 917312   ;;  %vm726_vm14 = vcmask 982912  }
  0x11   :  { %vm730_vm15 = vcmask 1048512  }
  0x13   :  { %182 = vadd.xlane.f32.xlu2 %v181_v15  ;;  %179 = vadd.xlane.f32.xlu1 %v178_v16  ;;  %v68_v15 = vld [vmem:[%s2260_s0 + $0x140] sm:$0xff]  ;;  %v67_v16 = vld [vmem:[%s2260_s0 + $0x138] sm:$0xff] }
  0x14   :  { %176 = vadd.xlane.f32.xlu0 %v175_v17  ;;  %v280_v17 = vsel %vm156_vm0, %v69_v14, 0.0  ;;  %v277_v18 = vsel %vm156_vm0, %v68_v15, 0.0  ;;  %v274_v19 = vsel %vm156_vm0, %v67_v16, 0.0 }
  0x1b   :  { %191 = vadd.xlane.f32.xlu2 %v190_v21  ;;  %188 = vadd.xlane.f32.xlu1 %v187_v22  ;;  %v71_v21 = vld [vmem:[%s2260_s0 + $0x158] sm:$0xff]  ;;  %v70_v22 = vld [vmem:[%s2260_s0 + $0x150] sm:$0xff] }
  0x1c   :  { %185 = vadd.xlane.f32.xlu0 %v184_v23  ;;  %v289_v23 = vsel %vm156_vm0, %v72_v20, 0.0  ;;  %v286_v24 = vsel %vm156_vm0, %v71_v21, 0.0  ;;  %v283_v25 = vsel %vm156_vm0, %v70_v22, 0.0  ;;  %v108_v20 = vld [vmem:[%s2260_s0 + $0x280] sm:$0xff] }
  0x23   :  { %200 = vadd.xlane.f32.xlu2 %v199_v27  ;;  %197 = vadd.xlane.f32.xlu1 %v196_v28  ;;  %v75_v27 = vld [vmem:[%s2260_s0 + $0x178] sm:$0xff]  ;;  %v74_v28 = vld [vmem:[%s2260_s0 + $0x170] sm:$0xff] }
  0x24   :  { %194 = vadd.xlane.f32.xlu0 %v193_v29 }
  0x2b   :  { %209 = vadd.xlane.f32.xlu2 %v208_v33  ;;  %206 = vadd.xlane.f32.xlu1 %v205_v34  ;;  %v298_v33 = vsel %vm156_vm0, %v75_v27, 0.0  ;;  %v295_v34 = vsel %vm156_vm0, %v74_v28, 0.0 }
  0x2c   :  { %203 = vadd.xlane.f32.xlu0 %v202_v35  ;;  %v1376_v35 = vand.u32 127, %v669_v26 }
  0x2e   :  { %v1380_v37 = vadd.s32 4294967272, %v1376_v35  ;;  %v1383_v38 = vadd.s32 4294967288, %v1376_v35  ;;  %v1395_v42 = vadd.s32 4294967256, %v1376_v35  ;;  %v1419_v61 = vadd.s32 4294967232, %v1376_v35 }
  0x2f   :  { %v1422_v62 = vadd.s32 4294967248, %v1376_v35  ;;  %v1444_v15 = vadd.s32 4294967216, %v1376_v35  ;;  %v1447_v16 = vadd.s32 4294967208, %v1376_v35 }
  0x33   :  { %218 = vadd.xlane.f32.xlu2 %v217_v39  ;;  %215 = vadd.xlane.f32.xlu1 %v214_v40  ;;  %v78_v39 = vld [vmem:[%s2260_s0 + $0x190] sm:$0xff]  ;;  %v1389_v40 = vadd.s32 4294967280, %v1376_v35 }
  0x34   :  { %212 = vadd.xlane.f32.xlu0 %v211_v41  ;;  %v77_v41 = vld [vmem:[%s2260_s0 + $0x188] sm:$0xff]  ;;  %v307_v48 = vsel %vm156_vm0, %v78_v39, 0.0  ;;  %v1478_v39 = vadd.s32 4294967200, %v1376_v35 }
  0x3b   :  { %227 = vadd.xlane.f32.xlu2 %v226_v45  ;;  %224 = vadd.xlane.f32.xlu1 %v223_v46  ;;  %v76_v45 = vld [vmem:[%s2260_s0 + $0x180] sm:$0xff]  ;;  %v1401_v46 = vadd.s32 4294967264, %v1376_v35 }
  0x3c   :  { %221 = vadd.xlane.f32.xlu0 %v220_v47  ;;  %v301_v54 = vsel %vm156_vm0, %v76_v45, 0.0 }
  0x43   :  { %236 = vadd.xlane.f32.xlu2 %v235_v51  ;;  %233 = vadd.xlane.f32.xlu1 %v232_v52  ;;  %v304_v52 = vsel %vm156_vm0, %v77_v41, 0.0  ;;  %v110_v41 = vld [vmem:[%s2260_s0 + $0x290] sm:$0xff] }
  0x44   :  { %230 = vadd.xlane.f32.xlu0 %v229_v53 }
  0x4b   :  { %245 = vadd.xlane.f32.xlu2 %v244_v57  ;;  %242 = vadd.xlane.f32.xlu1 %v241_v58 }
  0x4c   :  { %239 = vadd.xlane.f32.xlu0 %v238_v59  ;;  %v1415_v59 = vadd.s32 4294967240, %v1376_v35 }
  0x53   :  { %254 = vadd.xlane.f32.xlu2 %v253_v63  ;;  %251 = vadd.xlane.f32.xlu1 %v250_v0  ;;  %v79_v0 = vld [vmem:[%s2260_s0 + $0x198] sm:$0xff] }
  0x54   :  { %248 = vadd.xlane.f32.xlu0 %v247_v1  ;;  %v93_v1 = vld [vmem:[%s2260_s0 + $0x208] sm:$0xff]  ;;  %v310_v10 = vsel %vm156_vm0, %v79_v0, 0.0 }
  0x5b   :  { %263 = vadd.xlane.f32.xlu2 %v262_v5  ;;  %260 = vadd.xlane.f32.xlu1 %v259_v6  ;;  %v92_v5 = vld [vmem:[%s2260_s0 + $0x200] sm:$0xff] }
  0x5c   :  { %257 = vadd.xlane.f32.xlu0 %v256_v7 }
  0x63   :  { %272 = vadd.xlane.f32.xlu2 %v271_v11  ;;  %269 = vadd.xlane.f32.xlu1 %v268_v12  ;;  %v352_v11 = vsel %vm156_vm0, %v93_v1, 0.0  ;;  %v349_v12 = vsel %vm156_vm0, %v92_v5, 0.0 }
  0x64   :  { %266 = vadd.xlane.f32.xlu0 %v265_v13 }
  0x6b   :  { %281 = vadd.xlane.f32.xlu2 %v280_v17  ;;  %278 = vadd.xlane.f32.xlu1 %v277_v18  ;;  %v1451_v18 = vadd.s32 4294967224, %v1376_v35 }
  0x6c   :  { %275 = vadd.xlane.f32.xlu0 %v274_v19  ;;  %v109_v19 = vld [vmem:[%s2260_s0 + $0x288] sm:$0xff] }
  0x6d   :  { %v400_v28 = vsel %vm156_vm0, %v109_v19, 0.0  ;;  %v96_v19 = vld [vmem:[%s2260_s0 + $0x220] sm:$0xff] }
  0x73   :  { %290 = vadd.xlane.f32.xlu2 %v289_v23  ;;  %287 = vadd.xlane.f32.xlu1 %v286_v24  ;;  %v94_v23 = vld [vmem:[%s2260_s0 + $0x210] sm:$0xff] }
  0x74   :  { %284 = vadd.xlane.f32.xlu0 %v283_v25 }
  0x76   :  { %v171_v29 = vpop.xlane.xlu2 %170  ;;  %v165_v30 = vpop.xlane.xlu1 %164 }
  0x77   :  { %v159_v32 = vpop.xlane.xlu0 %158  ;;  %v677_v53 = vperm.slane %v165_v30, %v1389_v40  ;;  %v685_v57 = vperm.slane %v171_v29, %v1401_v46  ;;  %v397_v29 = vsel %vm156_vm0, %v108_v20, 0.0  ;;  %v355_v30 = vsel %vm156_vm0, %v94_v23, 0.0 }
  0x78   :  { %v671_v49 = vperm.slane %v159_v32, %v1376_v35 }
  0x7b   :  { %299 = vadd.xlane.f32.xlu2 %v298_v33  ;;  %296 = vadd.xlane.f32.xlu1 %v295_v34  ;;  %v1471_v33 = vadd.s32 4294967192, %v1376_v35  ;;  %v1474_v34 = vadd.s32 4294967184, %v1376_v35 }
  0x7c   :  { %293 = vadd.xlane.f32.xlu0 %v292_v36 }
  0x7e   :  { %v174_v43 = vpop.xlane.xlu2 %173  ;;  %v168_v44 = vpop.xlane.xlu1 %167 }
  0x7f   :  { %v162_v47 = vpop.xlane.xlu0 %161  ;;  %v681_v50 = vperm.slane %v168_v44, %v1380_v37  ;;  %v689_v55 = vperm.slane %v174_v43, %v1395_v42  ;;  %v95_v43 = vld [vmem:[%s2260_s0 + $0x218] sm:$0xff] }
  0x80   :  { %v673_v51 = vperm.slane %v162_v47, %v1383_v38  ;;  %v80_v47 = vld [vmem:[%s2260_s0 + $0x1a0] sm:$0xff] }
  0x82   :  { %v675_v56 = vsel %vm674_vm1, %v673_v51, %v671_v49 }
  0x83   :  { %v679_v58 = vsel %vm678_vm2, %v677_v53, %v675_v56  ;;  %308 = vadd.xlane.f32.xlu2 %v307_v48  ;;  %305 = vadd.xlane.f32.xlu1 %v304_v52  ;;  %v403_v52 = vsel %vm156_vm0, %v110_v41, 0.0  ;;  %v358_v53 = vsel %vm156_vm0, %v95_v43, 0.0  ;;  %v140_v41 = vld [vmem:[%s2260_s0 + $0x380] sm:$0xff] }
  0x84   :  { %v683_v60 = vsel %vm682_vm3, %v681_v50, %v679_v58  ;;  %302 = vadd.xlane.f32.xlu0 %v301_v54  ;;  %v313_v54 = vsel %vm156_vm0, %v80_v47, 0.0  ;;  %v1499_v58 = vadd.s32 4294967176, %v1376_v35 }
  0x85   :  { %v687_v63 = vsel %vm686_vm4, %v685_v57, %v683_v60  ;;  %v81_v60 = vld [vmem:[%s2260_s0 + $0x1a8] sm:$0xff] }
  0x86   :  { %v183_v2 = vpop.xlane.xlu2 %182  ;;  %v180_v3 = vpop.xlane.xlu1 %179  ;;  %v691_v4 = vsel %vm690_vm5, %v689_v55, %v687_v63  ;;  %v125_v63 = vld [vmem:[%s2260_s0 + $0x308] sm:$0xff] }
  0x87   :  { %v697_v6 = vperm.slane %v180_v3, %v1415_v59  ;;  %v177_v7 = vpop.xlane.xlu0 %176  ;;  %v701_v8 = vperm.slane %v183_v2, %v1419_v61  ;;  %v124_v2 = vld [vmem:[%s2260_s0 + $0x300] sm:$0xff] }
  0x88   :  { %v693_v9 = vperm.slane %v177_v7, %v1422_v62  ;;  %v316_v7 = vsel %vm156_vm0, %v81_v60, 0.0  ;;  %v97_v60 = vld [vmem:[%s2260_s0 + $0x228] sm:$0xff] }
  0x8a   :  { %v695_v13 = vsel %vm694_vm6, %v693_v9, %v691_v4 }
  0x8b   :  { %v699_v14 = vsel %vm698_vm7, %v697_v6, %v695_v13  ;;  %311 = vadd.xlane.f32.xlu2 %v310_v10  ;;  %353 = vadd.xlane.f32.xlu1 %v352_v11  ;;  %v445_v10 = vsel %vm156_vm0, %v124_v2, 0.0  ;;  %v111_v13 = vld [vmem:[%s2260_s0 + $0x298] sm:$0xff] }
  0x8c   :  { %350 = vadd.xlane.f32.xlu0 %v349_v12  ;;  %v703_v17 = vsel %vm702_vm8, %v701_v8, %v699_v14  ;;  %v448_v8 = vsel %vm156_vm0, %v125_v63, 0.0  ;;  %v126_v12 = vld [vmem:[%s2260_s0 + $0x310] sm:$0xff] }
  0x8e   :  { %v192_v21 = vpop.xlane.xlu2 %191  ;;  %v189_v22 = vpop.xlane.xlu1 %188 }
  0x8f   :  { %v709_v24 = vperm.slane %v189_v22, %v1444_v15  ;;  %v186_v25 = vpop.xlane.xlu0 %185  ;;  %v713_v26 = vperm.slane %v192_v21, %v1447_v16 }
  0x90   :  { %v705_v27 = vperm.slane %v186_v25, %v1451_v18  ;;  %v406_v25 = vsel %vm156_vm0, %v111_v13, 0.0 }
  0x92   :  { %v707_v31 = vsel %vm706_vm9, %v705_v27, %v703_v17 }
  0x93   :  { %v711_v32 = vsel %vm710_vm10, %v709_v24, %v707_v31  ;;  %401 = vadd.xlane.f32.xlu2 %v400_v28  ;;  %398 = vadd.xlane.f32.xlu1 %v397_v29  ;;  %v451_v24 = vsel %vm156_vm0, %v126_v12, 0.0  ;;  %v141_v31 = vld [vmem:[%s2260_s0 + $0x388] sm:$0xff] }
  0x94   :  { %356 = vadd.xlane.f32.xlu0 %v355_v30  ;;  %v715_v36 = vsel %vm714_vm11, %v713_v26, %v711_v32  ;;  %v361_v26 = vsel %vm156_vm0, %v96_v19, 0.0  ;;  %v82_v30 = vld [vmem:[%s2260_s0 + $0x1b0] sm:$0xff] }
  0x96   :  { %v201_v44 = vpop.xlane.xlu2 %200  ;;  %v198_v45 = vpop.xlane.xlu1 %197 }
  0x97   :  { %v721_v48 = vperm.slane %v198_v45, %v1471_v33  ;;  %v195_v49 = vpop.xlane.xlu0 %194  ;;  %v725_v50 = vperm.slane %v201_v44, %v1474_v34 }
  0x98   :  { %v717_v51 = vperm.slane %v195_v49, %v1478_v39  ;;  %v496_v49 = vsel %vm156_vm0, %v141_v31, 0.0 }
  0x9a   :  { %v719_v55 = vsel %vm2267_vm12, %v717_v51, %v715_v36 }
  0x9b   :  { %v723_v56 = vsel %vm2266_vm13, %v721_v48, %v719_v55  ;;  %404 = vadd.xlane.f32.xlu2 %v403_v52  ;;  %359 = vadd.xlane.f32.xlu1 %v358_v53  ;;  %v319_v48 = vsel %vm156_vm0, %v82_v30, 0.0  ;;  %v112_v55 = vld [vmem:[%s2260_s0 + $0x2a0] sm:$0xff] }
  0x9c   :  { %314 = vadd.xlane.f32.xlu0 %v313_v54  ;;  %v727_v57 = vsel %vm726_vm14, %v725_v50, %v723_v56  ;;  %v493_v50 = vsel %vm156_vm0, %v140_v41, 0.0  ;;  %v127_v54 = vld [vmem:[%s2260_s0 + $0x318] sm:$0xff] }
  0x9e   :  { %v210_v0 = vpop.xlane.xlu2 %209  ;;  %v207_v1 = vpop.xlane.xlu1 %206 }
  0x9f   :  { %v733_v3 = vperm.slane %v210_v0, %v1383_v38  ;;  %v732_v4 = vperm.slane %v207_v1, %v1376_v35  ;;  %v204_v5 = vpop.xlane.xlu0 %203 }
  0xa0   :  { %v729_v6 = vperm.slane %v204_v5, %v1499_v58  ;;  %v364_v5 = vsel %vm156_vm0, %v97_v60, 0.0 }
  0xa1   :  { %v734_v9 = vsel %vm674_vm1, %v733_v3, %v732_v4  ;;  %v454_v3 = vsel %vm156_vm0, %v127_v54, 0.0  ;;  %v409_v4 = vsel %vm156_vm0, %v112_v55, 0.0 }
  0xa2   :  { %v1518_v11 = vsel %vm730_vm15, %v729_v6, %v727_v57 }
  0xa3   :  { %317 = vadd.xlane.f32.xlu2 %v316_v7  ;;  %449 = vadd.xlane.f32.xlu1 %v448_v8 }
  0xa4   :  { %446 = vadd.xlane.f32.xlu0 %v445_v10  ;;  %v83_v10 = vld [vmem:[%s2260_s0 + $0x1b8] sm:$0xff] }
  0xa6   :  { %v219_v14 = vpop.xlane.xlu2 %218  ;;  %v216_v17 = vpop.xlane.xlu1 %215 }
  0xa7   :  { %v737_v20 = vperm.slane %v216_v17, %v1380_v37  ;;  %v213_v21 = vpop.xlane.xlu0 %212  ;;  %v739_v22 = vperm.slane %v219_v14, %v1401_v46  ;;  %v142_v14 = vld [vmem:[%s2260_s0 + $0x390] sm:$0xff] }
  0xa8   :  { %v735_v23 = vperm.slane %v213_v21, %v1389_v40 }
  0xaa   :  { %v736_v27 = vsel %vm678_vm2, %v735_v23, %v734_v9  ;;  %v98_v9 = vld [vmem:[%s2260_s0 + $0x230] sm:$0xff]  ;;  %v322_v23 = vsel %vm156_vm0, %v83_v10, 0.0  ;;  %v129_v10 = vld [vmem:[%s2260_s0 + $0x328] sm:$0xff] }
  0xab   :  { %v738_v28 = vsel %vm682_vm3, %v737_v20, %v736_v27  ;;  %452 = vadd.xlane.f32.xlu2 %v451_v24  ;;  %407 = vadd.xlane.f32.xlu1 %v406_v25  ;;  %v499_v24 = vsel %vm156_vm0, %v142_v14, 0.0 }
  0xac   :  { %362 = vadd.xlane.f32.xlu0 %v361_v26  ;;  %v740_v29 = vsel %vm686_vm4, %v739_v22, %v738_v28  ;;  %v367_v22 = vsel %vm156_vm0, %v98_v9, 0.0  ;;  %v143_v28 = vld [vmem:[%s2260_s0 + $0x398] sm:$0xff] }
  0xae   :  { %v228_v32 = vpop.xlane.xlu2 %227  ;;  %v225_v36 = vpop.xlane.xlu1 %224 }
  0xaf   :  { %v743_v43 = vperm.slane %v225_v36, %v1422_v62  ;;  %v222_v44 = vpop.xlane.xlu0 %221  ;;  %v745_v45 = vperm.slane %v228_v32, %v1415_v59  ;;  %v113_v32 = vld [vmem:[%s2260_s0 + $0x2a8] sm:$0xff] }
  0xb0   :  { %v741_v47 = vperm.slane %v222_v44, %v1395_v42  ;;  %v502_v44 = vsel %vm156_vm0, %v143_v28, 0.0 }
  0xb2   :  { %v742_v51 = vsel %vm690_vm5, %v741_v47, %v740_v29  ;;  %v128_v29 = vld [vmem:[%s2260_s0 + $0x320] sm:$0xff]  ;;  %v412_v47 = vsel %vm156_vm0, %v113_v32, 0.0 }
  0xb3   :  { %v744_v52 = vsel %vm694_vm6, %v743_v43, %v742_v51  ;;  %320 = vadd.xlane.f32.xlu2 %v319_v48  ;;  %497 = vadd.xlane.f32.xlu1 %v496_v49  ;;  %v114_v51 = vld [vmem:[%s2260_s0 + $0x2b0] sm:$0xff] }
  0xb4   :  { %494 = vadd.xlane.f32.xlu0 %v493_v50  ;;  %v746_v53 = vsel %vm698_vm7, %v745_v45, %v744_v52  ;;  %v457_v45 = vsel %vm156_vm0, %v128_v29, 0.0  ;;  %v99_v52 = vld [vmem:[%s2260_s0 + $0x238] sm:$0xff]  ;;  %v100_v29 = vld [vmem:[%s2260_s0 + $0x240] sm:$0xff] }
  0xb6   :  { %v237_v56 = vpop.xlane.xlu2 %236  ;;  %v234_v57 = vpop.xlane.xlu1 %233 }
  0xb7   :  { %v749_v63 = vperm.slane %v234_v57, %v1451_v18  ;;  %v231_v0 = vpop.xlane.xlu0 %230  ;;  %v751_v1 = vperm.slane %v237_v56, %v1444_v15  ;;  %v84_v56 = vld [vmem:[%s2260_s0 + $0x1c0] sm:$0xff] }
  0xb8   :  { %v747_v2 = vperm.slane %v231_v0, %v1419_v61  ;;  %v415_v0 = vsel %vm156_vm0, %v114_v51, 0.0  ;;  %v86_v51 = vld [vmem:[%s2260_s0 + $0x1d0] sm:$0xff] }
  0xba   :  { %v748_v6 = vsel %vm702_vm8, %v747_v2, %v746_v53  ;;  %v325_v2 = vsel %vm156_vm0, %v84_v56, 0.0 }
  0xbb   :  { %v750_v7 = vsel %vm706_vm9, %v749_v63, %v748_v6  ;;  %455 = vadd.xlane.f32.xlu2 %v454_v3  ;;  %410 = vadd.xlane.f32.xlu1 %v409_v4  ;;  %v85_v6 = vld [vmem:[%s2260_s0 + $0x1c8] sm:$0xff] }
  0xbc   :  { %365 = vadd.xlane.f32.xlu0 %v364_v5  ;;  %v752_v8 = vsel %vm710_vm10, %v751_v1, %v750_v7  ;;  %v370_v1 = vsel %vm156_vm0, %v99_v52, 0.0  ;;  %v144_v7 = vld [vmem:[%s2260_s0 + $0x3a0] sm:$0xff] }
  0xbe   :  { %v246_v12 = vpop.xlane.xlu2 %245  ;;  %v243_v13 = vpop.xlane.xlu1 %242 }
  0xbf   :  { %v755_v17 = vperm.slane %v243_v13, %v1478_v39  ;;  %v240_v19 = vpop.xlane.xlu0 %239  ;;  %v757_v20 = vperm.slane %v246_v12, %v1471_v33 }
  0xc0   :  { %v753_v21 = vperm.slane %v240_v19, %v1447_v16  ;;  %v328_v19 = vsel %vm156_vm0, %v85_v6, 0.0 }
  0xc2   :  { %v754_v25 = vsel %vm714_vm11, %v753_v21, %v752_v8  ;;  %v460_v21 = vsel %vm156_vm0, %v129_v10, 0.0 }
  0xc3   :  { %v756_v26 = vsel %vm2267_vm12, %v755_v17, %v754_v25  ;;  %368 = vadd.xlane.f32.xlu2 %v367_v22  ;;  %323 = vadd.xlane.f32.xlu1 %v322_v23  ;;  %v130_v25 = vld [vmem:[%s2260_s0 + $0x330] sm:$0xff] }
  0xc4   :  { %500 = vadd.xlane.f32.xlu0 %v499_v24  ;;  %v758_v27 = vsel %vm2266_vm13, %v757_v20, %v756_v26  ;;  %vm949_vm13 = vcmask 1041409   ;;  %v505_v20 = vsel %vm156_vm0, %v144_v7, 0.0  ;;  %v115_v26 = vld [vmem:[%s2260_s0 + $0x2b8] sm:$0xff] }
  0xc6   :  { %v255_v30 = vpop.xlane.xlu2 %254  ;;  %v252_v31 = vpop.xlane.xlu1 %251 }
  0xc7   :  { %v761_v36 = vperm.slane %v252_v31, %v1499_v58  ;;  %v249_v41 = vpop.xlane.xlu0 %248  ;;  %v763_v53 = vperm.slane %v255_v30, %v1376_v35 }
  0xc8   :  { %v759_v43 = vperm.slane %v249_v41, %v1474_v34  ;;  %v463_v41 = vsel %vm156_vm0, %v130_v25, 0.0 }
  0xca   :  { %v760_v48 = vsel %vm726_vm14, %v759_v43, %v758_v27  ;;  %v418_v43 = vsel %vm156_vm0, %v115_v26, 0.0 }
  0xcb   :  { %v762_v49 = vsel %vm730_vm15, %v761_v36, %v760_v48  ;;  %503 = vadd.xlane.f32.xlu2 %v502_v44  ;;  %458 = vadd.xlane.f32.xlu1 %v457_v45  ;;  %v373_v44 = vsel %vm156_vm0, %v100_v29, 0.0 }
  0xcc   :  { %v1609_v50 = vsel %vm949_vm13, %v762_v49, %v1518_v11  ;;  %413 = vadd.xlane.f32.xlu0 %v412_v47  ;;  %v101_v49 = vld [vmem:[%s2260_s0 + $0x248] sm:$0xff]  ;;  %vm2268_vm13 = vcmask 917312  }
  0xce   :  { %v264_v54 = vpop.xlane.xlu2 %263  ;;  %v261_v55 = vpop.xlane.xlu1 %260 }
  0xcf   :  { %v766_v11 = vperm.slane %v261_v55, %v1389_v40  ;;  %v258_v57 = vpop.xlane.xlu0 %257  ;;  %v768_v60 = vperm.slane %v264_v54, %v1380_v37  ;;  %v145_v54 = vld [vmem:[%s2260_s0 + $0x3a8] sm:$0xff] }
  0xd0   :  { %v764_v63 = vperm.slane %v258_v57, %v1383_v38 }
  0xd2   :  { %v765_v3 = vsel %vm674_vm1, %v764_v63, %v763_v53  ;;  %v331_v63 = vsel %vm156_vm0, %v86_v51, 0.0  ;;  %v132_v51 = vld [vmem:[%s2260_s0 + $0x340] sm:$0xff] }
  0xd3   :  { %v767_v4 = vsel %vm678_vm2, %v766_v11, %v765_v3  ;;  %416 = vadd.xlane.f32.xlu2 %v415_v0  ;;  %371 = vadd.xlane.f32.xlu1 %v370_v1  ;;  %v508_v0 = vsel %vm156_vm0, %v145_v54, 0.0 }
  0xd4   :  { %326 = vadd.xlane.f32.xlu0 %v325_v2  ;;  %v769_v5 = vsel %vm682_vm3, %v768_v60, %v767_v4  ;;  %v376_v60 = vsel %vm156_vm0, %v101_v49, 0.0  ;;  %v146_v4 = vld [vmem:[%s2260_s0 + $0x3b0] sm:$0xff] }
  0xd6   :  { %v273_v8 = vpop.xlane.xlu2 %272  ;;  %v270_v9 = vpop.xlane.xlu1 %269 }
  0xd7   :  { %v772_v12 = vperm.slane %v270_v9, %v1395_v42  ;;  %v267_v13 = vpop.xlane.xlu0 %266  ;;  %v774_v14 = vperm.slane %v273_v8, %v1422_v62  ;;  %v116_v8 = vld [vmem:[%s2260_s0 + $0x2c0] sm:$0xff] }
  0xd8   :  { %v770_v17 = vperm.slane %v267_v13, %v1401_v46 }
  0xda   :  { %v771_v22 = vsel %vm686_vm4, %v770_v17, %v769_v5  ;;  %v131_v5 = vld [vmem:[%s2260_s0 + $0x338] sm:$0xff] }
  0xdb   :  { %v773_v23 = vsel %vm690_vm5, %v772_v12, %v771_v22  ;;  %329 = vadd.xlane.f32.xlu2 %v328_v19  ;;  %506 = vadd.xlane.f32.xlu1 %v505_v20  ;;  %v466_v17 = vsel %vm156_vm0, %v131_v5, 0.0  ;;  %v421_v19 = vsel %vm156_vm0, %v116_v8, 0.0 }
  0xdc   :  { %461 = vadd.xlane.f32.xlu0 %v460_v21  ;;  %v775_v24 = vsel %vm694_vm6, %v774_v14, %v773_v23  ;;  %v511_v14 = vsel %vm156_vm0, %v146_v4, 0.0  ;;  %v117_v23 = vld [vmem:[%s2260_s0 + $0x2c8] sm:$0xff]  ;;  %v103_v4 = vld [vmem:[%s2260_s0 + $0x258] sm:$0xff] }
  0xde   :  { %v282_v27 = vpop.xlane.xlu2 %281  ;;  %v279_v28 = vpop.xlane.xlu1 %278 }
  0xdf   :  { %v778_v30 = vperm.slane %v279_v28, %v1419_v61  ;;  %v276_v31 = vpop.xlane.xlu0 %275  ;;  %v780_v32 = vperm.slane %v282_v27, %v1451_v18  ;;  %v87_v28 = vld [vmem:[%s2260_s0 + $0x1d8] sm:$0xff] }
  0xe0   :  { %v776_v36 = vperm.slane %v276_v31, %v1415_v59 }
  0xe2   :  { %v777_v45 = vsel %vm698_vm7, %v776_v36, %v775_v24  ;;  %v102_v24 = vld [vmem:[%s2260_s0 + $0x250] sm:$0xff]  ;;  %v424_v36 = vsel %vm156_vm0, %v117_v23, 0.0 }
  0xe3   :  { %v779_v47 = vsel %vm702_vm8, %v778_v30, %v777_v45  ;;  %464 = vadd.xlane.f32.xlu2 %v463_v41  ;;  %419 = vadd.xlane.f32.xlu1 %v418_v43  ;;  %v379_v41 = vsel %vm156_vm0, %v102_v24, 0.0  ;;  %v88_v45 = vld [vmem:[%s2260_s0 + $0x1e0] sm:$0xff] }
  0xe4   :  { %374 = vadd.xlane.f32.xlu0 %v373_v44  ;;  %v781_v48 = vsel %vm706_vm9, %v780_v32, %v779_v47  ;;  %v147_v47 = vld [vmem:[%s2260_s0 + $0x3b8] sm:$0xff] }
  0xe6   :  { %v291_v52 = vpop.xlane.xlu2 %290  ;;  %v288_v53 = vpop.xlane.xlu1 %287 }
  0xe7   :  { %v784_v55 = vperm.slane %v288_v53, %v1447_v16  ;;  %v285_v56 = vpop.xlane.xlu0 %284  ;;  %v786_v11 = vperm.slane %v291_v52, %v1478_v39 }
  0xe8   :  { %v782_v57 = vperm.slane %v285_v56, %v1444_v15  ;;  %v337_v56 = vsel %vm156_vm0, %v88_v45, 0.0  ;;  %v119_v45 = vld [vmem:[%s2260_s0 + $0x2d8] sm:$0xff] }
  0xea   :  { %v783_v1 = vsel %vm710_vm10, %v782_v57, %v781_v48 }
  0xeb   :  { %v785_v2 = vsel %vm714_vm11, %v784_v55, %v783_v1  ;;  %377 = vadd.xlane.f32.xlu2 %v376_v60  ;;  %332 = vadd.xlane.f32.xlu1 %v331_v63  ;;  %v469_v60 = vsel %vm156_vm0, %v132_v51, 0.0  ;;  %v118_v1 = vld [vmem:[%s2260_s0 + $0x2d0] sm:$0xff] }
  0xec   :  { %509 = vadd.xlane.f32.xlu0 %v508_v0  ;;  %v787_v3 = vsel %vm2267_vm12, %v786_v11, %v785_v2  ;;  %vm951_vm12 = vcmask 1042434   ;;  %v514_v11 = vsel %vm156_vm0, %v147_v47, 0.0  ;;  %v133_v0 = vld [vmem:[%s2260_s0 + $0x348] sm:$0xff] }
  0xee   :  { %v300_v6 = vpop.xlane.xlu2 %299  ;;  %v297_v7 = vpop.xlane.xlu1 %296 }
  0xef   :  { %v790_v9 = vperm.slane %v297_v7, %v1474_v34  ;;  %v294_v10 = vpop.xlane.xlu0 %293  ;;  %v792_v12 = vperm.slane %v300_v6, %v1499_v58 }
  0xf0   :  { %v788_v13 = vperm.slane %v294_v10, %v1471_v33  ;;  %v427_v10 = vsel %vm156_vm0, %v118_v1, 0.0 }
  0xf2   :  { %v789_v20 = vsel %vm2268_vm13, %v788_v13, %v787_v3  ;;  %v382_v13 = vsel %vm156_vm0, %v103_v4, 0.0 }
  0xf3   :  { %v791_v21 = vsel %vm726_vm14, %v790_v9, %v789_v20  ;;  %512 = vadd.xlane.f32.xlu2 %v511_v14  ;;  %467 = vadd.xlane.f32.xlu1 %v466_v17  ;;  %v472_v9 = vsel %vm156_vm0, %v133_v0, 0.0  ;;  %v104_v17 = vld [vmem:[%s2260_s0 + $0x260] sm:$0xff]  ;;  %v90_v0 = vld [vmem:[%s2260_s0 + $0x1f0] sm:$0xff] }
  0xf4   :  { %v793_v22 = vsel %vm730_vm15, %v792_v12, %v791_v21  ;;  %422 = vadd.xlane.f32.xlu0 %v421_v19  ;;  %v89_v19 = vld [vmem:[%s2260_s0 + $0x1e8] sm:$0xff] }
  0xf5   :  { %v1709_v25 = vsel %vm951_vm12, %v793_v22, %v1609_v50  ;;  %v334_v50 = vsel %vm156_vm0, %v87_v28, 0.0  ;;  %v148_v22 = vld [vmem:[%s2260_s0 + $0x3c0] sm:$0xff]  ;;  %v385_v28 = vsel %vm156_vm0, %v104_v17, 0.0  ;;  %vm957_vm12 = vcmask 1045509  }
  0xf6   :  { %v309_v26 = vpop.xlane.xlu2 %308  ;;  %v306_v27 = vpop.xlane.xlu1 %305 }
  0xf7   :  { %v797_v29 = vperm.slane %v309_v26, %v1389_v40  ;;  %v795_v30 = vperm.slane %v306_v27, %v1383_v38  ;;  %v303_v31 = vpop.xlane.xlu0 %302 }
  0xf8   :  { %v794_v32 = vperm.slane %v303_v31, %v1376_v35 }
  0xfa   :  { %v796_v43 = vsel %vm674_vm1, %v795_v30, %v794_v32  ;;  %v517_v32 = vsel %vm156_vm0, %v148_v22, 0.0 }
  0xfb   :  { %425 = vadd.xlane.f32.xlu2 %v424_v36  ;;  %380 = vadd.xlane.f32.xlu1 %v379_v41  ;;  %v798_v44 = vsel %vm678_vm2, %v797_v29, %v796_v43  ;;  %v340_v29 = vsel %vm156_vm0, %v89_v19, 0.0  ;;  %v149_v41 = vld [vmem:[%s2260_s0 + $0x3c8] sm:$0xff]  ;;  %v135_v19 = vld [vmem:[%s2260_s0 + $0x358] sm:$0xff] }
  0xfc   :  { %335 = vadd.xlane.f32.xlu0 %v334_v50  ;;  %v134_v50 = vld [vmem:[%s2260_s0 + $0x350] sm:$0xff] }
  0xfe   :  { %v312_v48 = vpop.xlane.xlu2 %311  ;;  %v354_v49 = vpop.xlane.xlu1 %353 }
  0xff   :  { %v799_v52 = vperm.slane %v312_v48, %v1380_v37  ;;  %v826_v53 = vperm.slane %v354_v49, %v1383_v38  ;;  %v351_v54 = vpop.xlane.xlu0 %350 }
 0x100   :  { %v825_v55 = vperm.slane %v351_v54, %v1376_v35 }
 0x101   :  { %v800_v57 = vsel %vm682_vm3, %v799_v52, %v798_v44  ;;  %v520_v52 = vsel %vm156_vm0, %v149_v41, 0.0 }
 0x102   :  { %v827_v63 = vsel %vm674_vm1, %v826_v53, %v825_v55  ;;  %v475_v53 = vsel %vm156_vm0, %v134_v50, 0.0  ;;  %v430_v55 = vsel %vm156_vm0, %v119_v45, 0.0 }
 0x103   :  { %338 = vadd.xlane.f32.xlu2 %v337_v56  ;;  %515 = vadd.xlane.f32.xlu1 %v514_v11  ;;  %v120_v11 = vld [vmem:[%s2260_s0 + $0x2e0] sm:$0xff] }
 0x104   :  { %470 = vadd.xlane.f32.xlu0 %v469_v60 }
 0x106   :  { %v402_v2 = vpop.xlane.xlu2 %401  ;;  %v399_v3 = vpop.xlane.xlu1 %398 }
 0x107   :  { %v857_v5 = vperm.slane %v402_v2, %v1383_v38  ;;  %v856_v6 = vperm.slane %v399_v3, %v1376_v35  ;;  %v357_v7 = vpop.xlane.xlu0 %356 }
 0x108   :  { %v828_v8 = vperm.slane %v357_v7, %v1389_v40 }
 0x109   :  { %v858_v12 = vsel %vm674_vm1, %v857_v5, %v856_v6  ;;  %v433_v5 = vsel %vm156_vm0, %v120_v11, 0.0 }
 0x10a   :  { %v829_v14 = vsel %vm678_vm2, %v828_v8, %v827_v63 }
 0x10b   :  { %473 = vadd.xlane.f32.xlu2 %v472_v9  ;;  %428 = vadd.xlane.f32.xlu1 %v427_v10  ;;  %v343_v9 = vsel %vm156_vm0, %v90_v0, 0.0 }
 0x10c   :  { %383 = vadd.xlane.f32.xlu0 %v382_v13  ;;  %v150_v13 = vld [vmem:[%s2260_s0 + $0x3d0] sm:$0xff] }
 0x10e   :  { %v405_v20 = vpop.xlane.xlu2 %404  ;;  %v360_v21 = vpop.xlane.xlu1 %359 }
 0x10f   :  { %v859_v23 = vperm.slane %v405_v20, %v1389_v40  ;;  %v830_v24 = vperm.slane %v360_v21, %v1380_v37  ;;  %v315_v26 = vpop.xlane.xlu0 %314 }
 0x110   :  { %v801_v27 = vperm.slane %v315_v26, %v1401_v46  ;;  %v523_v26 = vsel %vm156_vm0, %v150_v13, 0.0 }
 0x111   :  { %v860_v30 = vsel %vm678_vm2, %v859_v23, %v858_v12  ;;  %v831_v31 = vsel %vm682_vm3, %v830_v24, %v829_v14  ;;  %v91_v12 = vld [vmem:[%s2260_s0 + $0x1f8] sm:$0xff] }
 0x112   :  { %v802_v36 = vsel %vm686_vm4, %v801_v27, %v800_v57  ;;  %v105_v57 = vld [vmem:[%s2260_s0 + $0x268] sm:$0xff]  ;;  %v346_v24 = vsel %vm156_vm0, %v91_v12, 0.0 }
 0x113   :  { %386 = vadd.xlane.f32.xlu2 %v385_v28  ;;  %341 = vadd.xlane.f32.xlu1 %v340_v29  ;;  %v388_v6 = vsel %vm156_vm0, %v105_v57, 0.0  ;;  %v478_v28 = vsel %vm156_vm0, %v135_v19, 0.0 }
 0x114   :  { %518 = vadd.xlane.f32.xlu0 %v517_v32  ;;  %v106_v32 = vld [vmem:[%s2260_s0 + $0x270] sm:$0xff] }
 0x116   :  { %v318_v43 = vpop.xlane.xlu2 %317  ;;  %v450_v44 = vpop.xlane.xlu1 %449 }
 0x117   :  { %v803_v47 = vperm.slane %v318_v43, %v1395_v42  ;;  %v888_v48 = vperm.slane %v450_v44, %v1383_v38  ;;  %v447_v49 = vpop.xlane.xlu0 %446 }
 0x118   :  { %v887_v51 = vperm.slane %v447_v49, %v1376_v35  ;;  %v391_v49 = vsel %vm156_vm0, %v106_v32, 0.0 }
 0x119   :  { %v804_v54 = vsel %vm690_vm5, %v803_v47, %v802_v36 }
 0x11a   :  { %v889_v56 = vsel %vm674_vm1, %v888_v48, %v887_v51 }
 0x11b   :  { %521 = vadd.xlane.f32.xlu2 %v520_v52  ;;  %476 = vadd.xlane.f32.xlu1 %v475_v53  ;;  %v122_v52 = vld [vmem:[%s2260_s0 + $0x2f0] sm:$0xff]  ;;  %v107_v53 = vld [vmem:[%s2260_s0 + $0x278] sm:$0xff] }
 0x11c   :  { %431 = vadd.xlane.f32.xlu0 %v430_v55  ;;  %v439_v0 = vsel %vm156_vm0, %v122_v52, 0.0 }
 0x11e   :  { %v453_v60 = vpop.xlane.xlu2 %452  ;;  %v408_v63 = vpop.xlane.xlu1 %407 }
 0x11f   :  { %v890_v1 = vperm.slane %v453_v60, %v1389_v40  ;;  %v861_v2 = vperm.slane %v408_v63, %v1380_v37  ;;  %v363_v3 = vpop.xlane.xlu0 %362 }
 0x120   :  { %v832_v4 = vperm.slane %v363_v3, %v1401_v46 }
 0x121   :  { %v891_v7 = vsel %vm678_vm2, %v890_v1, %v889_v56  ;;  %v862_v8 = vsel %vm682_vm3, %v861_v2, %v860_v30  ;;  %v151_v56 = vld [vmem:[%s2260_s0 + $0x3d8] sm:$0xff]  ;;  %v394_v1 = vsel %vm156_vm0, %v107_v53, 0.0 }
 0x122   :  { %v833_v10 = vsel %vm686_vm4, %v832_v4, %v831_v31  ;;  %v526_v4 = vsel %vm156_vm0, %v151_v56, 0.0 }
 0x123   :  { %434 = vadd.xlane.f32.xlu2 %v433_v5  ;;  %389 = vadd.xlane.f32.xlu1 %v388_v6  ;;  %v123_v6 = vld [vmem:[%s2260_s0 + $0x2f8] sm:$0xff] }
 0x124   :  { %344 = vadd.xlane.f32.xlu0 %v343_v9  ;;  %v137_v9 = vld [vmem:[%s2260_s0 + $0x368] sm:$0xff] }
 0x126   :  { %v321_v14 = vpop.xlane.xlu2 %320  ;;  %v498_v17 = vpop.xlane.xlu1 %497 }
 0x127   :  { %v805_v20 = vperm.slane %v321_v14, %v1422_v62  ;;  %v919_v21 = vperm.slane %v498_v17, %v1383_v38  ;;  %v495_v22 = vpop.xlane.xlu0 %494  ;;  %v136_v38 = vld [vmem:[%s2260_s0 + $0x360] sm:$0xff]  ;;  %v442_v17 = vsel %vm156_vm0, %v123_v6, 0.0 }
 0x128   :  { %v918_v23 = vperm.slane %v495_v22, %v1376_v35  ;;  %v121_v35 = vld [vmem:[%s2260_s0 + $0x2e8] sm:$0xff]  ;;  %v481_v44 = vsel %vm156_vm0, %v136_v38, 0.0  ;;  %v484_v22 = vsel %vm156_vm0, %v137_v9, 0.0 }
 0x129   :  { %v806_v27 = vsel %vm694_vm6, %v805_v20, %v804_v54  ;;  %v436_v45 = vsel %vm156_vm0, %v121_v35, 0.0 }
 0x12a   :  { %v920_v29 = vsel %vm674_vm1, %v919_v21, %v918_v23  ;;  %vm2270_vm1 = vmmov %vm2268_vm13 }
 0x12b   :  { %347 = vadd.xlane.f32.xlu2 %v346_v24  ;;  %524 = vadd.xlane.f32.xlu1 %v523_v26  ;;  %v139_v24 = vld [vmem:[%s2260_s0 + $0x378] sm:$0xff] }
 0x12c   :  { %479 = vadd.xlane.f32.xlu0 %v478_v28  ;;  %v138_v28 = vld [vmem:[%s2260_s0 + $0x370] sm:$0xff]  ;;  %v490_v32 = vsel %vm156_vm0, %v139_v24, 0.0 }
 0x12e   :  { %v456_v30 = vpop.xlane.xlu2 %455  ;;  %v411_v31 = vpop.xlane.xlu1 %410 }
 0x12f   :  { %v892_v36 = vperm.slane %v456_v30, %v1380_v37  ;;  %v863_v41 = vperm.slane %v411_v31, %v1401_v46  ;;  %v366_v50 = vpop.xlane.xlu0 %365 }
 0x130   :  { %v834_v43 = vperm.slane %v366_v50, %v1395_v42  ;;  %v487_v50 = vsel %vm156_vm0, %v138_v28, 0.0 }
 0x131   :  { %v893_v47 = vsel %vm682_vm3, %v892_v36, %v891_v7  ;;  %v864_v48 = vsel %vm686_vm4, %v863_v41, %v862_v8 }
 0x132   :  { %v835_v51 = vsel %vm690_vm5, %v834_v43, %v833_v10 }
 0x133   :  { %482 = vadd.xlane.f32.xlu2 %v481_v44  ;;  %437 = vadd.xlane.f32.xlu1 %v436_v45  ;;  %v155_v44 = vld [vmem:[%s2260_s0 + $0x3f8] sm:$0xff] }
 0x134   :  { %392 = vadd.xlane.f32.xlu0 %v391_v49 }
 0x136   :  { %v369_v54 = vpop.xlane.xlu2 %368  ;;  %v324_v55 = vpop.xlane.xlu1 %323 }
 0x137   :  { %v836_v11 = vperm.slane %v369_v54, %v1422_v62  ;;  %v807_v57 = vperm.slane %v324_v55, %v1415_v59  ;;  %v501_v60 = vpop.xlane.xlu0 %500  ;;  %v538_v54 = vsel %vm156_vm0, %v155_v44, 0.0 }
 0x138   :  { %v921_v63 = vperm.slane %v501_v60, %v1389_v40  ;;  %v152_v40 = vld [vmem:[%s2260_s0 + $0x3e0] sm:$0xff] }
 0x139   :  { %v837_v2 = vsel %vm694_vm6, %v836_v11, %v835_v51  ;;  %v808_v3 = vsel %vm698_vm7, %v807_v57, %v806_v27  ;;  %v529_v19 = vsel %vm156_vm0, %v152_v40, 0.0 }
 0x13a   :  { %v922_v5 = vsel %vm678_vm2, %v921_v63, %v920_v29  ;;  %vm953_vm2 = vcmask 1043459  }
 0x13b   :  { %440 = vadd.xlane.f32.xlu2 %v439_v0  ;;  %395 = vadd.xlane.f32.xlu1 %v394_v1 }
 0x13c   :  { %527 = vadd.xlane.f32.xlu0 %v526_v4 }
 0x13e   :  { %v504_v7 = vpop.xlane.xlu2 %503  ;;  %v459_v8 = vpop.xlane.xlu1 %458 }
 0x13f   :  { %v923_v10 = vperm.slane %v504_v7, %v1380_v37  ;;  %v894_v12 = vperm.slane %v459_v8, %v1401_v46  ;;  %v414_v13 = vpop.xlane.xlu0 %413  ;;  %v153_v37 = vld [vmem:[%s2260_s0 + $0x3e8] sm:$0xff] }
 0x140   :  { %v865_v14 = vperm.slane %v414_v13, %v1395_v42  ;;  %v532_v31 = vsel %vm156_vm0, %v153_v37, 0.0 }
 0x141   :  { %v924_v20 = vsel %vm682_vm3, %v923_v10, %v922_v5  ;;  %v895_v21 = vsel %vm686_vm4, %v894_v12, %v893_v47 }
 0x142   :  { %v866_v23 = vsel %vm690_vm5, %v865_v14, %v864_v48  ;;  %v154_v48 = vld [vmem:[%s2260_s0 + $0x3f0] sm:$0xff] }
 0x143   :  { %443 = vadd.xlane.f32.xlu2 %v442_v17  ;;  %530 = vadd.xlane.f32.xlu1 %v529_v19  ;;  %v535_v11 = vsel %vm156_vm0, %v154_v48, 0.0  ;;  %vm2269_vm0 = vcmask 851712  }
 0x144   :  { %485 = vadd.xlane.f32.xlu0 %v484_v22  ;;  %vm2271_vm3 = vmmov %vm2269_vm0 }
 0x145   :  { %vm2275_vm13 = vmmov %vm2269_vm0 }
 0x146   :  { %v417_v26 = vpop.xlane.xlu2 %416  ;;  %v372_v27 = vpop.xlane.xlu1 %371 }
 0x147   :  { %v867_v29 = vperm.slane %v417_v26, %v1422_v62  ;;  %v838_v38 = vperm.slane %v372_v27, %v1415_v59  ;;  %v327_v35 = vpop.xlane.xlu0 %326 }
 0x148   :  { %v809_v30 = vperm.slane %v327_v35, %v1419_v61 }
 0x149   :  { %v868_v36 = vsel %vm694_vm6, %v867_v29, %v866_v23  ;;  %v839_v41 = vsel %vm698_vm7, %v838_v38, %v837_v2 }
 0x14a   :  { %v810_v43 = vsel %vm702_vm8, %v809_v30, %v808_v3 }
 0x14b   :  { %533 = vadd.xlane.f32.xlu1 %v532_v31  ;;  %491 = vadd.xlane.f32.xlu2 %v490_v32 }
 0x14c   :  { %488 = vadd.xlane.f32.xlu0 %v487_v50 }
 0x14e   :  { %v330_v45 = vpop.xlane.xlu2 %329  ;;  %v507_v47 = vpop.xlane.xlu1 %506 }
 0x14f   :  { %v811_v49 = vperm.slane %v330_v45, %v1451_v18  ;;  %v925_v51 = vperm.slane %v507_v47, %v1401_v46  ;;  %v462_v52 = vpop.xlane.xlu0 %461 }
 0x150   :  { %v896_v53 = vperm.slane %v462_v52, %v1395_v42 }
 0x151   :  { %v812_v55 = vsel %vm706_vm9, %v811_v49, %v810_v43  ;;  %v926_v56 = vsel %vm686_vm4, %v925_v51, %v924_v20  ;;  %vm2272_vm4 = vmmov %vm2270_vm1 }
 0x152   :  { %v897_v57 = vsel %vm690_vm5, %v896_v53, %v895_v21 }
 0x153   :  { %539 = vadd.xlane.f32.xlu1 %v538_v54 }
 0x154   :  { %536 = vadd.xlane.f32.xlu0 %v535_v11 }
 0x156   :  { %v465_v60 = vpop.xlane.xlu2 %464  ;;  %v420_v63 = vpop.xlane.xlu1 %419 }
 0x157   :  { %v898_v0 = vperm.slane %v465_v60, %v1422_v62  ;;  %v869_v46 = vperm.slane %v420_v63, %v1415_v59  ;;  %v375_v1 = vpop.xlane.xlu0 %374  ;;  %v1030_v60 = vld [vmem:[%s2261_s1 + $0x1e0] sm:$0xff]  ;;  %v1031_v63 = vld [vmem:[%s2261_s1 + $0x1e8] sm:$0xff] }
 0x158   :  { %v840_v2 = vperm.slane %v375_v1, %v1419_v61  ;;  %1044 = vmatpush.msra.mxu0 %v1030_v60  ;;  %1064 = vmatpush.msra.mxu1 %v1031_v63 }
 0x159   :  { %v899_v3 = vsel %vm694_vm6, %v898_v0, %v897_v57  ;;  %v870_v4 = vsel %vm698_vm7, %v869_v46, %v868_v36  ;;  %v1032_v0 = vld [vmem:[%s2261_s1 + $0x1f0] sm:$0xff]  ;;  %v1033_v46 = vld [vmem:[%s2261_s1 + $0x1f8] sm:$0xff] }
 0x15a   :  { %v841_v5 = vsel %vm702_vm8, %v840_v2, %v839_v41  ;;  %1084 = vmatpush.msra.mxu2 %v1032_v0  ;;  %1104 = vmatpush.msra.mxu3 %v1033_v46  ;;  %v994_v0 = vld [vmem:[%s2261_s1 + $0xc0] sm:$0xff]  ;;  %v995_v46 = vld [vmem:[%s2261_s1 + $0xc8] sm:$0xff] }
 0x15e   :  { %v378_v6 = vpop.xlane.xlu2 %377  ;;  %v333_v40 = vpop.xlane.xlu1 %332 }
 0x15f   :  { %v842_v7 = vperm.slane %v378_v6, %v1451_v18  ;;  %v813_v8 = vperm.slane %v333_v40, %v1444_v15  ;;  %v510_v9 = vpop.xlane.xlu0 %509  ;;  %v1028_v6 = vld [vmem:[%s2261_s1 + $0x1d0] sm:$0xff]  ;;  %v1029_v40 = vld [vmem:[%s2261_s1 + $0x1d8] sm:$0xff] }
 0x160   :  { %v927_v10 = vperm.slane %v510_v9, %v1395_v42  ;;  %1085 = vmatpush.msra.mxu2 %v1028_v6  ;;  %1105 = vmatpush.msra.mxu3 %v1029_v40  ;;  %v1024_v9 = vld [vmem:[%s2261_s1 + $0x1b0] sm:$0xff]  ;;  %v990_v40 = vld [vmem:[%s2261_s1 + $0xa0] sm:$0xff] }
 0x161   :  { %v843_v12 = vsel %vm706_vm9, %v842_v7, %v841_v5  ;;  %v814_v13 = vsel %vm710_vm10, %v813_v8, %v812_v55  ;;  %v1027_v5 = vld [vmem:[%s2261_s1 + $0x1c8] sm:$0xff]  ;;  %v1022_v7 = vld [vmem:[%s2261_s1 + $0x1a0] sm:$0xff] }
 0x162   :  { %v928_v14 = vsel %vm690_vm5, %v927_v10, %v926_v56  ;;  %1065 = vmatpush.msra.mxu1 %v1027_v5  ;;  %v1023_v8 = vld [vmem:[%s2261_s1 + $0x1a8] sm:$0xff]  ;;  %v1025_v10 = vld [vmem:[%s2261_s1 + $0x1b8] sm:$0xff]  ;;  %1086 = vmatpush.msra.mxu2 %v1024_v9  ;;  %vm955_vm5 = vcmask 1044484  }
 0x163   :  { %1106 = vmatpush.msra.mxu3 %v1025_v10  ;;  %v997_v5 = vld [vmem:[%s2261_s1 + $0xd8] sm:$0xff] }
 0x164   :  { %1066 = vmatpush.msra.mxu1 %v1023_v8  ;;  %v992_v8 = vld [vmem:[%s2261_s1 + $0xb0] sm:$0xff]  ;;  %v993_v10 = vld [vmem:[%s2261_s1 + $0xb8] sm:$0xff] }
 0x166   :  { %v513_v17 = vpop.xlane.xlu2 %512  ;;  %v468_v19 = vpop.xlane.xlu1 %467 }
 0x167   :  { %v929_v20 = vperm.slane %v513_v17, %v1422_v62  ;;  %v900_v21 = vperm.slane %v468_v19, %v1415_v59  ;;  %v423_v22 = vpop.xlane.xlu0 %422  ;;  %v1021_v17 = vld [vmem:[%s2261_s1 + $0x198] sm:$0xff]  ;;  %v1014_v19 = vld [vmem:[%s2261_s1 + $0x160] sm:$0xff] }
 0x168   :  { %v871_v23 = vperm.slane %v423_v22, %v1419_v61  ;;  %v1017_v22 = vld [vmem:[%s2261_s1 + $0x178] sm:$0xff]  ;;  %1107 = vmatpush.msra.mxu3 %v1021_v17  ;;  %v982_v17 = vld [vmem:[%s2261_s1 + $0x60] sm:$0xff] }
 0x169   :  { %v930_v37 = vsel %vm694_vm6, %v929_v20, %v928_v14  ;;  %v901_v24 = vsel %vm698_vm7, %v900_v21, %v899_v3  ;;  %v1020_v14 = vld [vmem:[%s2261_s1 + $0x190] sm:$0xff]  ;;  %v1015_v20 = vld [vmem:[%s2261_s1 + $0x168] sm:$0xff]  ;;  %vm2273_vm6 = vmmov %vm2269_vm0 }
 0x16a   :  { %v872_v42 = vsel %vm702_vm8, %v871_v23, %v870_v4  ;;  %v1026_v4 = vld [vmem:[%s2261_s1 + $0x1c0] sm:$0xff]  ;;  %v1016_v21 = vld [vmem:[%s2261_s1 + $0x170] sm:$0xff]  ;;  %1087 = vmatpush.msra.mxu2 %v1020_v14  ;;  %1108 = vmatpush.msra.mxu3 %v1017_v22  ;;  %v989_v14 = vld [vmem:[%s2261_s1 + $0x98] sm:$0xff] }
 0x16b   :  { %1045 = vmatpush.msra.mxu0 %v1026_v4  ;;  %v996_v4 = vld [vmem:[%s2261_s1 + $0xd0] sm:$0xff] }
 0x16c   :  { %1088 = vmatpush.msra.mxu2 %v1016_v21  ;;  %v985_v21 = vld [vmem:[%s2261_s1 + $0x78] sm:$0xff] }
 0x16d   :  { %1046 = vmatpush.msra.mxu0 %v1022_v7  ;;  %v991_v7 = vld [vmem:[%s2261_s1 + $0xa8] sm:$0xff] }
 0x16e   :  { %v426_v26 = vpop.xlane.xlu2 %425  ;;  %v381_v27 = vpop.xlane.xlu1 %380 }
 0x16f   :  { %v873_v28 = vperm.slane %v426_v26, %v1451_v18  ;;  %v844_v29 = vperm.slane %v381_v27, %v1444_v15  ;;  %v336_v38 = vpop.xlane.xlu0 %335  ;;  %v1011_v26 = vld [vmem:[%s2261_s1 + $0x148] sm:$0xff]  ;;  %v1012_v27 = vld [vmem:[%s2261_s1 + $0x150] sm:$0xff] }
 0x170   :  { %v815_v62 = vperm.slane %v336_v38, %v1447_v16  ;;  %1089 = vmatpush.msra.mxu2 %v1012_v27  ;;  %v1007_v38 = vld [vmem:[%s2261_s1 + $0x128] sm:$0xff] }
 0x171   :  { %v874_v35 = vsel %vm706_vm9, %v873_v28, %v872_v42  ;;  %v845_v30 = vsel %vm710_vm10, %v844_v29, %v843_v12  ;;  %v1018_v12 = vld [vmem:[%s2261_s1 + $0x180] sm:$0xff]  ;;  %v1013_v28 = vld [vmem:[%s2261_s1 + $0x158] sm:$0xff]  ;;  %v979_v27 = vld [vmem:[%s2261_s1 + $0x48] sm:$0xff] }
 0x172   :  { %v816_v31 = vsel %vm714_vm11, %v815_v62, %v814_v13  ;;  %v1019_v13 = vld [vmem:[%s2261_s1 + $0x188] sm:$0xff]  ;;  %1047 = vmatpush.msra.mxu0 %v1018_v12  ;;  %v1010_v42 = vld [vmem:[%s2261_s1 + $0x140] sm:$0xff]  ;;  %1109 = vmatpush.msra.mxu3 %v1013_v28  ;;  %v1008_v62 = vld [vmem:[%s2261_s1 + $0x130] sm:$0xff] }
 0x173   :  { %1067 = vmatpush.msra.mxu1 %v1019_v13  ;;  %v1006_v29 = vld [vmem:[%s2261_s1 + $0x120] sm:$0xff]  ;;  %1090 = vmatpush.msra.mxu2 %v1008_v62  ;;  %v987_v13 = vld [vmem:[%s2261_s1 + $0x88] sm:$0xff]  ;;  %v980_v28 = vld [vmem:[%s2261_s1 + $0x50] sm:$0xff] }
 0x174   :  { %1048 = vmatpush.msra.mxu0 %v1014_v19  ;;  %v986_v12 = vld [vmem:[%s2261_s1 + $0x80] sm:$0xff]  ;;  %v983_v19 = vld [vmem:[%s2261_s1 + $0x68] sm:$0xff] }
 0x175   :  { %1068 = vmatpush.msra.mxu1 %v1015_v20  ;;  %v984_v20 = vld [vmem:[%s2261_s1 + $0x70] sm:$0xff]  ;;  %v975_v62 = vld [vmem:[%s2261_s1 + $0x28] sm:$0xff] }
 0x176   :  { %v339_v32 = vpop.xlane.xlu2 %338  ;;  %v516_v36 = vpop.xlane.xlu1 %515  ;;  %1049 = vmatpush.msra.mxu0 %v1010_v42 }
 0x177   :  { %v817_v41 = vperm.slane %v339_v32, %v1478_v39  ;;  %v931_v50 = vperm.slane %v516_v36, %v1415_v59  ;;  %v471_v43 = vpop.xlane.xlu0 %470  ;;  %1069 = vmatpush.msra.mxu1 %v1011_v26  ;;  %v1004_v36 = vld [vmem:[%s2261_s1 + $0x110] sm:$0xff]  ;;  %v978_v26 = vld [vmem:[%s2261_s1 + $0x40] sm:$0xff] }
 0x178   :  { %v902_v44 = vperm.slane %v471_v43, %v1419_v61  ;;  %1050 = vmatpush.msra.mxu0 %v1006_v29  ;;  %1091 = vmatpush.msra.mxu2 %v1004_v36  ;;  %v981_v29 = vld [vmem:[%s2261_s1 + $0x58] sm:$0xff]  ;;  %v970_v36 = vld [vmem:[%s2261_s1] sm:$0xff] }
 0x179   :  { %v1940_v45 = vsel %vm2269_vm0, %v817_v41, %v816_v31  ;;  %v1943_v47 = vsel %vm698_vm7, %v931_v50, %v930_v37  ;;  %1070 = vmatpush.msra.mxu1 %v1007_v38  ;;  %v1003_v31 = vld [vmem:[%s2261_s1 + $0x108] sm:$0xff]  ;;  %v1005_v41 = vld [vmem:[%s2261_s1 + $0x118] sm:$0xff]  ;;  %v998_v50 = vld [vmem:[%s2261_s1 + $0xe0] sm:$0xff] }
 0x17a   :  { %v1946_v48 = vsel %vm702_vm8, %v902_v44, %v901_v24  ;;  %v999_v44 = vld [vmem:[%s2261_s1 + $0xe8] sm:$0xff]  ;;  %v974_v38 = vld [vmem:[%s2261_s1 + $0x20] sm:$0xff]  ;;  %vm2274_vm7 = vmmov %vm2270_vm1 }
 0x17b   :  { %1071 = vmatpush.msra.mxu1 %v1003_v31  ;;  %v977_v31 = vld [vmem:[%s2261_s1 + $0x38] sm:$0xff]  ;;  %vm2276_vm0 = vmmov %vm2270_vm1 }
 0x17d   :  { %1072 = vmatpush.msra.mxu1 %v999_v44 }
 0x17e   :  { %v1948_v49 = vpop.xlane.xlu2 %473  ;;  %v429_v51 = vpop.xlane.xlu1 %428 }
 0x17f   :  { %v875_v52 = vperm.slane %v429_v51, %v1444_v15  ;;  %v384_v53 = vpop.xlane.xlu0 %383  ;;  %v1000_v51 = vld [vmem:[%s2261_s1 + $0xf0] sm:$0xff]  ;;  %1073 = vmatpush.msra.mxu1 %v995_v46 }
 0x180   :  { %v846_v59 = vperm.slane %v384_v53, %v1447_v16  ;;  %1092 = vmatpush.msra.mxu2 %v1000_v51 }
 0x181   :  { %v1953_v54 = vsel %vm710_vm10, %v875_v52, %v874_v35  ;;  %v1009_v35 = vld [vmem:[%s2261_s1 + $0x138] sm:$0xff]  ;;  %1074 = vmatpush.msra.mxu1 %v991_v7 }
 0x182   :  { %v1956_v55 = vsel %vm714_vm11, %v846_v59, %v845_v30  ;;  %v1002_v30 = vld [vmem:[%s2261_s1 + $0x100] sm:$0xff]  ;;  %1110 = vmatpush.msra.mxu3 %v1009_v35  ;;  %v1001_v52 = vld [vmem:[%s2261_s1 + $0xf8] sm:$0xff]  ;;  %1093 = vmatpush.msra.mxu2 %v996_v4  ;;  %v976_v35 = vld [vmem:[%s2261_s1 + $0x30] sm:$0xff] }
 0x183   :  { %1051 = vmatpush.msra.mxu0 %v1002_v30  ;;  %1075 = vmatpush.msra.mxu1 %v987_v13 }
 0x184   :  { %1111 = vmatpush.msra.mxu3 %v1005_v41  ;;  %1094 = vmatpush.msra.mxu2 %v992_v8  ;;  %v971_v41 = vld [vmem:[%s2261_s1 + $0x8] sm:$0xff] }
 0x185   :  { %1052 = vmatpush.msra.mxu0 %v998_v50  ;;  %1076 = vmatpush.msra.mxu1 %v983_v19 }
 0x186   :  { %v1958_v56 = vpop.xlane.xlu2 %386  ;;  %v1960_v11 = vpop.xlane.xlu1 %341  ;;  %1112 = vmatpush.msra.mxu3 %v1001_v52 }
 0x187   :  { %v1962_v57 = vpop.xlane.xlu0 %518  ;;  %v819_v32 = vperm.slane %v1960_v11, %v1471_v33  ;;  %1053 = vmatpush.msra.mxu0 %v994_v0  ;;  %1077 = vmatpush.msra.mxu1 %v979_v27  ;;  %v848_v30 = vperm.slane %v1958_v56, %v1478_v39  ;;  %v972_v56 = vld [vmem:[%s2261_s1 + $0x10] sm:$0xff] }
 0x188   :  { %1113 = vmatpush.msra.mxu3 %v997_v5 }
 0x189   :  { %v820_v11 = vsel %vm2270_vm1, %v819_v32, %v1940_v45  ;;  %1054 = vmatpush.msra.mxu0 %v990_v40  ;;  %1078 = vmatpush.msra.mxu1 %v975_v62  ;;  %vm959_vm1 = vcmask 1046534  }
 0x18a   :  { %1114 = vmatpush.msra.mxu3 %v993_v10 }
 0x18b   :  { %1055 = vmatpush.msra.mxu0 %v986_v12  ;;  %1079 = vmatpush.msra.mxu1 %v971_v41 }
 0x18c   :  { %1115 = vmatpush.msra.mxu3 %v989_v14 }
 0x18d   :  { %1056 = vmatpush.msra.mxu0 %v982_v17 }
 0x18e   :  { %v1976_v1 = vpop.xlane.xlu2 %521  ;;  %v1978_v2 = vpop.xlane.xlu1 %476  ;;  %1116 = vmatpush.msra.mxu3 %v985_v21 }
 0x18f   :  { %v1980_v3 = vpop.xlane.xlu0 %431  ;;  %1057 = vmatpush.msra.mxu0 %v978_v26 }
 0x190   :  { %1117 = vmatpush.msra.mxu3 %v981_v29  ;;  %v877_v0 = vperm.slane %v1980_v3, %v1447_v16 }
 0x191   :  { %1058 = vmatpush.msra.mxu0 %v974_v38 }
 0x192   :  { %1118 = vmatpush.msra.mxu3 %v977_v31 }
 0x193   :  { %1059 = vmatpush.msra.mxu0 %v970_v36 }
 0x196   :  { %v2030_v23 = vpop.xlane.xlu2 %434  ;;  %v2032_v37 = vpop.xlane.xlu1 %389 }
 0x197   :  { %v345_v24 = vpop.xlane.xlu0 %344  ;;  %v850_v32 = vperm.slane %v2032_v37, %v1471_v33  ;;  %v973_v37 = vld [vmem:[%s2261_s1 + $0x18] sm:$0xff]  ;;  %v879_v4 = vperm.slane %v2030_v23, %v1478_v39 }
 0x198   :  { %v821_v43 = vperm.slane %v345_v24, %v1474_v34  ;;  %1119 = vmatpush.msra.mxu3 %v973_v37 }
 0x19a   :  { %v822_v45 = vsel %vm726_vm14, %v821_v43, %v820_v11  ;;  %v849_v43 = vsel %vm2271_vm3, %v848_v30, %v1956_v55 }
 0x19b   :  { %v851_v52 = vsel %vm2272_vm4, %v850_v32, %v849_v43  ;;  %v1124_v43 = vld [vmem:[%s2264_s3] sm:$0xf] }
 0x19e   :  { %v348_v53 = vpop.xlane.xlu2 %347  ;;  %v2085_v59 = vpop.xlane.xlu1 %524 }
 0x19f   :  { %v823_v60 = vperm.slane %v348_v53, %v1499_v58  ;;  %v2090_v63 = vpop.xlane.xlu0 %479  ;;  %v937_v29 = vperm.slane %v2085_v59, %v1444_v15 }
 0x1a0   :  { %v908_v14 = vperm.slane %v2090_v63, %v1447_v16  ;;  %v933_v63 = vperm.slane %v1962_v57, %v1419_v61 }
 0x1a1   :  { %v824_v6 = vsel %vm730_vm15, %v823_v60, %v822_v45 }
 0x1a2   :  { %v2117_v9 = vsel %vm953_vm2, %v824_v6, %v1709_v25  ;;  %v988_v25 = vld [vmem:[%s2261_s1 + $0x90] sm:$0xff]  ;;  %v878_v6 = vsel %vm714_vm11, %v877_v0, %v1953_v54  ;;  %v906_v54 = vperm.slane %v1978_v2, %v1444_v15  ;;  %v934_v61 = vsel %vm702_vm8, %v933_v63, %v1943_v47  ;;  %vm2277_vm2 = vmmov %vm2271_vm3 }
 0x1a3   :  { %1095 = vmatpush.msra.mxu2 %v988_v25  ;;  %v880_v40 = vsel %vm2273_vm6, %v879_v4, %v878_v6  ;;  %vm2278_vm8 = vmmov %vm2276_vm0  ;;  %vm961_vm3 = vcmask 1047559  }
 0x1a5   :  { %1096 = vmatpush.msra.mxu2 %v984_v20 }
 0x1a6   :  { %v2146_v22 = vpop.xlane.xlu2 %482  ;;  %v438_v24 = vpop.xlane.xlu1 %437 }
 0x1a7   :  { %v393_v42 = vpop.xlane.xlu0 %392  ;;  %1097 = vmatpush.msra.mxu2 %v980_v28  ;;  %v881_v45 = vperm.slane %v438_v24, %v1471_v33  ;;  %v910_v17 = vperm.slane %v2146_v22, %v1478_v39 }
 0x1a8   :  { %v852_v50 = vperm.slane %v393_v42, %v1474_v34 }
 0x1a9   :  { %1098 = vmatpush.msra.mxu2 %v976_v35  ;;  %v882_v3 = vsel %vm2274_vm7, %v881_v45, %v880_v40  ;;  %v1128_v45 = vperm.slane %v1124_v43, 2 }
 0x1aa   :  { %v853_v60 = vsel %vm726_vm14, %v852_v50, %v851_v52 }
 0x1ab   :  { %1099 = vmatpush.msra.mxu2 %v972_v56 }
 0x1ae   :  { %v441_v44 = vpop.xlane.xlu2 %440  ;;  %v396_v51 = vpop.xlane.xlu1 %395 }
 0x1af   :  { %v854_v53 = vperm.slane %v396_v51, %v1499_v58  ;;  %v528_v11 = vpop.xlane.xlu0 %527  ;;  %v883_v5 = vperm.slane %v441_v44, %v1474_v34 }
 0x1b0   :  { %v939_v62 = vperm.slane %v528_v11, %v1447_v16 }
 0x1b1   :  { %v855_v46 = vsel %vm730_vm15, %v854_v53, %v853_v60  ;;  %v884_v23 = vsel %vm726_vm14, %v883_v5, %v882_v3  ;;  %v1126_v53 = vperm.slane %v1124_v43, 0  ;;  %v1127_v60 = vperm.slane %v1124_v43, 1 }
 0x1b2   :  { %v956_v55 = vsel %vm955_vm5, %v855_v46, %v2117_v9  ;;  %v904_v9 = vperm.slane %v1948_v49, %v1451_v18 }
 0x1b4   :  { %v905_v19 = vsel %vm706_vm9, %v904_v9, %v1946_v48  ;;  %v935_v48 = vperm.slane %v1976_v1, %v1451_v18 }
 0x1b5   :  { %v907_v21 = vsel %vm710_vm10, %v906_v54, %v905_v19 }
 0x1b6   :  { %v444_v7 = vpop.xlane.xlu2 %443  ;;  %v531_v8 = vpop.xlane.xlu1 %530  ;;  %v909_v42 = vsel %vm714_vm11, %v908_v14, %v907_v21  ;;  %v936_v18 = vsel %vm706_vm9, %v935_v48, %v934_v61  ;;  %vm1148_vm9 = vcmask 7168  }
 0x1b7   :  { %v885_v10 = vperm.slane %v444_v7, %v1499_v58  ;;  %v486_v12 = vpop.xlane.xlu0 %485  ;;  %v911_v27 = vsel %vm2275_vm13, %v910_v17, %v909_v42  ;;  %v941_v57 = vperm.slane %v531_v8, %v1478_v39  ;;  %v938_v31 = vsel %vm710_vm10, %v937_v29, %v936_v18 }
 0x1b8   :  { %v912_v20 = vperm.slane %v486_v12, %v1471_v33  ;;  %v940_v15 = vsel %vm714_vm11, %v939_v62, %v938_v31  ;;  %v1129_v8 = vperm.slane %v1124_v43, 3 }
 0x1b9   :  { %v886_v13 = vsel %vm730_vm15, %v885_v10, %v884_v23  ;;  %v942_v36 = vsel %vm2277_vm2, %v941_v57, %v940_v15 }
 0x1ba   :  { %v958_v25 = vsel %vm957_vm12, %v886_v13, %v956_v55  ;;  %v913_v28 = vsel %vm2276_vm0, %v912_v20, %v911_v27 }
 0x1be   :  { %v534_v49 = vpop.xlane.xlu1 %533  ;;  %v492_v24 = vpop.xlane.xlu2 %491 }
 0x1bf   :  { %v489_v26 = vpop.xlane.xlu0 %488  ;;  %v916_v2 = vperm.slane %v492_v24, %v1499_v58  ;;  %v943_v1 = vperm.slane %v534_v49, %v1471_v33 }
 0x1c0   :  { %v914_v22 = vperm.slane %v489_v26, %v1474_v34 }
 0x1c1   :  { %v944_v47 = vsel %vm2278_vm8, %v943_v1, %v942_v36 }
 0x1c2   :  { %v915_v38 = vsel %vm726_vm14, %v914_v22, %v913_v28 }
 0x1c3   :  { %v917_v35 = vsel %vm730_vm15, %v916_v2, %v915_v38 }
 0x1c4   :  { %v960_v30 = vsel %vm959_vm1, %v917_v35, %v958_v25 }
 0x1c6   :  { %v540_v32 = vpop.xlane.xlu1 %539 }
 0x1c7   :  { %v537_v59 = vpop.xlane.xlu0 %536  ;;  %v947_v16 = vperm.slane %v540_v32, %v1499_v58  ;;  %v10_v58 = vstv %s2262_s4 }
 0x1c8   :  { %v945_v41 = vperm.slane %v537_v59, %v1474_v34  ;;  %11 = vst [vmem:[#allocation3] sm:$0x1] %v10_v58  ;;  %v1034_v34 = vld [vmem:[%s2263_s2] sm:$0xf] }
 0x1c9   :  { %v1036_v50 = vperm.slane %v1034_v34, 0  ;;  %v1037_v37 = vperm.slane %v1034_v34, 1  ;;  %v1038_v0 = vperm.slane %v1034_v34, 2  ;;  %v1039_v46 = vperm.slane %v1034_v34, 3 }
 0x1ca   :  { %v946_v39 = vsel %vm726_vm14, %v945_v41, %v944_v47 }
 0x1cb   :  { %v948_v56 = vsel %vm730_vm15, %v947_v16, %v946_v39 }
 0x1cc   :  { %v962_v33 = vsel %vm961_vm3, %v948_v56, %v960_v30 }
 0x1cd   :  { %1060 = vmatmul.f32.vlgmr.msra.gmra.mxu0 %v962_v33  ;;  %1080 = vmatmul.f32.vlgmr.msra.gmra.mxu1 %v962_v33 }
 0x1ce   :  { %1100 = vmatmul.f32.vlgmr.msra.gmra.mxu2 %v962_v33  ;;  %1120 = vmatmul.f32.vlgmr.msra.gmra.mxu3 %v962_v33 }
 0x1cf   :  { %v1154_v13 = vld [vmem:[#allocation3] ss:$0 sm:$0xff] }
 0x24a   :  { %v1061_v44 = vpop.f32.mrf.mxu0  ;;  %v1081_v51 = vpop.f32.mrf.mxu1 }
 0x24b   :  { %v1062_v52 = vadd.f32 %v1061_v44, %v1036_v50  ;;  %v1082_v11 = vadd.f32 %v1081_v51, %v1037_v37 }
 0x24d   :  { %v1134_v4 = vmul.f32 %v1126_v53, %v1062_v52  ;;  %v1135_v55 = vmul.f32 %v1127_v60, %v1082_v11 }
 0x24f   :  { %v1138_v3 = vadd.f32 %v1135_v55, %v1134_v4 }
 0x251   :  { %v1101_v5 = vpop.f32.mrf.mxu2  ;;  %v1121_v6 = vpop.f32.mrf.mxu3 }
 0x252   :  { %v1102_v40 = vadd.f32 %v1101_v5, %v1038_v0  ;;  %v1122_v7 = vadd.f32 %v1121_v6, %v1039_v46 }
 0x254   :  { %v1136_v10 = vmul.f32 %v1128_v45, %v1102_v40  ;;  %v1137_v12 = vmul.f32 %v1129_v8, %v1122_v7 }
 0x256   :  { %v1139_v23 = vadd.f32 %v1138_v3, %v1136_v10 }
 0x258   :  { %v1140_v9 = vadd.f32 %v1139_v23, %v1137_v12 }
 0x25a   :  { %1141 = vadd.xlane.f32.xlu2 %v1140_v9 }
 0x2cd   :  { %v1142_v54 = vpop.xlane.xlu2 %1141 }
 0x2ce   :  { %v1147_v25 = vadd.f32 %v1154_v13, %v1142_v54 }
 0x2d0   :  { %1149 = vst.msk [vmem:[%s2265_s5] sm:$0xff] %vm1148_vm9, %v1147_v25 }

</bundles_post_ra>
